<compile_context>
chip_gen: v7x
topology: tpu7x:2x2x1
jax: 0.10.0
libtpu: 0.0.40
codegen_flags: <defaults>
</compile_context>

<pallas_src>
import math
import functools

import jax
import jax.numpy as jnp
from jax.experimental import pallas as pl
from jax.experimental.pallas import tpu as pltpu


def _round_up(x, m):
    return (x + m - 1) // m * m


def _pick_blocks(seq_len):
    """Return (blk_q, blk_k) with blk_k | blk_q, both multiples of 8.

    Long sequences: blk_q=512 (cuts K/V HBM re-reads and grid-step overhead),
    blk_k=256 (bounds the fp32 (blk_q, blk_k) score-tile working set).
    Short sequences: a single padded tile (blk_q == blk_k == round_up(S, 8)).
    """
    if seq_len <= 512:
        blk = _round_up(seq_len, 8)
        return blk, blk
    return 512, 256


def _flash_attention_kernel(qi_map_ref, ki_map_ref,          # scalar prefetch (SMEM)
                            q_ref, k_ref, v_ref, o_ref,      # blocked I/O (VMEM)
                            qs_ref, m_ref, l_ref, acc_ref,   # scratch (VMEM)
                            *, scale, num_heads, head_dim,
                            blk_q, blk_k, r, k_last):
    """One grid step: one (batch, flattened causal (qi, ki)) pair, all heads.

    Refs:
      qi_map_ref/ki_map_ref : (T,) int32 SMEM — decode of the triangular axis
      q_ref  : (blk_q, H*D)  input dtype (bf16/fp16), resident across a qi group
      k_ref  : (blk_k, H*D)
      v_ref  : (blk_k, H*D)
      o_ref  : (blk_q, H*D)  output block (resident across a qi group)
      qs_ref : (H, blk_q, D) scaled, per-head-arranged Q (filled at ki == 0)
      m_ref  : (blk_q, H)    fp32 running row max (per head)
      l_ref  : (blk_q, H)    fp32 running softmax denominator (per head)
      acc_ref: (blk_q, H*D)  fp32 un-normalized context accumulator
    """
    H, D = num_heads, head_dim
    t = pl.program_id(1)
    qi = qi_map_ref[t]
    ki = ki_map_ref[t]

    @pl.when(ki == 0)
    def _init():
        # -1e30 (finite) instead of -inf: exp(m_prev - m_new) is exactly 0 on
        # the first tile and can never produce NaN.
        m_ref[...] = jnp.full_like(m_ref, -1e30)
        l_ref[...] = jnp.zeros_like(l_ref)
        acc_ref[...] = jnp.zeros_like(acc_ref)
        # Hoisted once per q tile: fold 1/sqrt(D) into Q (bf16) and split the
        # heads into separate slabs so the kv loop does plain loads instead of
        # per-step lane-selects + re-scaling.
        q = q_ref[...] * scale
        for h in range(H):
            qs_ref[h] = q[:, h * D:(h + 1) * D]

    def _process(masked):
        k = k_ref[...]                          # (blk_k, H*D)
        v = v_ref[...]
        m_prev = m_ref[...]                     # (blk_q, H) fp32
        l_prev = l_ref[...]

        if masked:
            # Absolute-index causal mask (blk_q may differ from blk_k and the
            # sequence may be zero-padded; padded key columns have index >= S
            # and are therefore masked for every real query row).
            row = (jax.lax.broadcasted_iota(jnp.int32, (blk_q, blk_k), 0)
                   + qi * blk_q)
            col = (jax.lax.broadcasted_iota(jnp.int32, (blk_q, blk_k), 1)
                   + ki * blk_k)
            keep = row >= col

        m_news, alphas, sums, pvs = [], [], [], []
        for h in range(H):
            sl = slice(h * D, (h + 1) * D)
            # BMM1: q @ k^T, bf16 operands on the MXU, fp32 accumulation.
            s = jax.lax.dot_general(
                qs_ref[h], k[:, sl], (((1,), (1,)), ((), ())),
                preferred_element_type=jnp.float32)      # (blk_q, blk_k) f32
            if masked:
                s = jnp.where(keep, s, -1e30)

            # Online softmax statistics in fp32.
            m_prev_h = m_prev[:, h:h + 1]                 # (blk_q, 1)
            m_new = jnp.maximum(m_prev_h, jnp.max(s, axis=-1, keepdims=True))
            alpha = jnp.exp(m_prev_h - m_new)
            p = jnp.exp(s - m_new)                        # un-normalized probs
            sums.append(jnp.sum(p, axis=-1, keepdims=True))

            # BMM2: probs @ V, bf16 operands, fp32 accumulation.
            pvs.append(jax.lax.dot_general(
                p.astype(v.dtype), v[:, sl], (((1,), (0,)), ((), ())),
                preferred_element_type=jnp.float32))      # (blk_q, D) f32

            m_news.append(m_new)
            alphas.append(alpha)

        # Lane-dense state updates: one full-width store each for m, l, acc
        # instead of per-head masked sub-slice read-modify-writes.
        m_ref[...] = jnp.concatenate(m_news, axis=1)                 # (blk_q, H)
        alpha_all = jnp.concatenate(alphas, axis=1)                  # (blk_q, H)
        l_ref[...] = alpha_all * l_prev + jnp.concatenate(sums, axis=1)
        alpha_full = jnp.concatenate(
            [jnp.broadcast_to(a, (blk_q, D)) for a in alphas], axis=1)
        acc_ref[...] = alpha_full * acc_ref[...] + jnp.concatenate(pvs, axis=1)

    # Tile classification: fully-below-diagonal tiles do zero mask work.
    needs_mask = ki >= qi * r

    @pl.when(jnp.logical_not(needs_mask))
    def _full_tile():
        _process(masked=False)

    @pl.when(needs_mask)
    def _partial_tile():
        _process(masked=True)

    # Finalize on the last enumerated kv tile of this q tile: normalize after
    # BMM2 (D muls/row/head instead of blk_k); approx reciprocal -> EUP slot.
    last_ki = jnp.minimum((qi + 1) * r - 1, k_last)

    @pl.when(ki == last_ki)
    def _finalize():
        inv_l = pl.reciprocal(l_ref[...], approx=True)               # (blk_q, H)
        inv_full = jnp.concatenate(
            [jnp.broadcast_to(inv_l[:, h:h + 1], (blk_q, D)) for h in range(H)],
            axis=1)
        # Single lane-dense (blk_q, H*D) store into the output block.
        o_ref[...] = (acc_ref[...] * inv_full).astype(o_ref.dtype)


def dot_product_attention(query, key, value):
    """query/key/value: (S, B, H, D) -> output (S, B, H*D)."""
    S, B, H, D = query.shape
    HD = H * D
    scale = 1.0 / math.sqrt(D)

    # BlockSpec lane legality: blocks are HD lanes wide out of B*HD.
    assert HD % 128 == 0 or B == 1, (
        "num_heads * kv_channels must be a multiple of 128 (or batch == 1)")

    blk_q, blk_k = _pick_blocks(S)
    r = blk_q // blk_k                      # kv tiles per q tile row-band
    S_pad = _round_up(S, blk_q)             # zero-pad S; pad keys are causally masked
    n_q = S_pad // blk_q
    k_last = (S - 1) // blk_k               # last kv tile any REAL row needs

    # Triangular schedule: only causally-needed (qi, ki) pairs, trimmed so the
    # (padded) last q tile stops at the last kv tile a real row needs.
    qis, kis = [], []
    for qi in range(n_q):
        for ki in range(min((qi + 1) * r, k_last + 1)):
            qis.append(qi)
            kis.append(ki)
    qi_map = jnp.asarray(qis, dtype=jnp.int32)
    ki_map = jnp.asarray(kis, dtype=jnp.int32)
    T = len(qis)

    def _pad_and_flatten(x):
        if S_pad != S:
            x = jnp.pad(x, ((0, S_pad - S), (0, 0), (0, 0), (0, 0)))
        return x.reshape(S_pad, B * HD)     # free reshape: trailing dims contiguous

    q2 = _pad_and_flatten(query)
    k2 = _pad_and_flatten(key)
    v2 = _pad_and_flatten(value)

    kernel = functools.partial(
        _flash_attention_kernel, scale=scale, num_heads=H, head_dim=D,
        blk_q=blk_q, blk_k=blk_k, r=r, k_last=k_last)

    # Advisory cost estimate (causal half-work).
    itemsize = jnp.dtype(query.dtype).itemsize
    flops = int(2 * B * HD * S * S)                     # BMM1 + BMM2, causal
    transcendentals = int(B * H * S * S // 2)           # exp
    io_bytes = S_pad * B * HD * itemsize
    bytes_accessed = int(2 * io_bytes + io_bytes * (n_q + 1))  # Q+O once, K/V re-read

    out = pl.pallas_call(
        kernel,
        out_shape=jax.ShapeDtypeStruct((S_pad, B * HD), query.dtype),
        grid_spec=pltpu.PrefetchScalarGridSpec(
            num_scalar_prefetch=2,
            grid=(B, T),                                 # flattened causal axis last
            in_specs=[
                pl.BlockSpec((blk_q, HD), lambda b, t, qi_m, ki_m: (qi_m[t], b)),  # Q
                pl.BlockSpec((blk_k, HD), lambda b, t, qi_m, ki_m: (ki_m[t], b)),  # K
                pl.BlockSpec((blk_k, HD), lambda b, t, qi_m, ki_m: (ki_m[t], b)),  # V
            ],
            out_specs=pl.BlockSpec((blk_q, HD), lambda b, t, qi_m, ki_m: (qi_m[t], b)),
            scratch_shapes=[
                pltpu.VMEM((H, blk_q, D), query.dtype),   # scaled per-head Q
                pltpu.VMEM((blk_q, H), jnp.float32),      # running max m
                pltpu.VMEM((blk_q, H), jnp.float32),      # running denom l
                pltpu.VMEM((blk_q, HD), jnp.float32),     # fp32 context accumulator
            ],
        ),
        compiler_params=pltpu.CompilerParams(
            # batch axis shards across TensorCores (v7x megacore); the
            # flattened causal axis carries the online-softmax state.
            dimension_semantics=("parallel", "arbitrary"),
        ),
        cost_estimate=pl.CostEstimate(
            flops=flops, transcendentals=transcendentals,
            bytes_accessed=bytes_accessed),
    )(qi_map, ki_map, q2, k2, v2)

    out = out[:S]                                   # drop padded query rows
    return out.reshape(S, B, HD)


def _reference_attention(query, key, value):
    """Pure-JAX reference matching the PyTorch module semantics."""
    S, B, H, D = query.shape
    scale = 1.0 / math.sqrt(D)
    q = jnp.transpose(query, (1, 2, 0, 3)).astype(jnp.float32)   # (B,H,S,D)
    k = jnp.transpose(key, (1, 2, 0, 3)).astype(jnp.float32)
    v = jnp.transpose(value, (1, 2, 0, 3)).astype(jnp.float32)
    s = jnp.einsum("bhqd,bhkd->bhqk", q, k) * scale
    mask = jnp.tril(jnp.ones((S, S), dtype=bool))
    s = jnp.where(mask, s, -jnp.inf)
    p = jax.nn.softmax(s, axis=-1)
    ctx = jnp.einsum("bhqk,bhkd->bhqd", p, v)                    # (B,H,S,D)
    ctx = jnp.transpose(ctx, (2, 0, 1, 3)).reshape(S, B, H * D)
    return ctx.astype(query.dtype)


if __name__ == "__main__":
    # Small shapes: seq=16, batch=2, heads=4, kv_channels=32  (H*D = 128 lanes)
    S, B, H, D = 16, 2, 4, 32
    key0 = jax.random.PRNGKey(0)
    kq, kk, kv = jax.random.split(key0, 3)
    dtype = jnp.bfloat16
    query = jax.random.normal(kq, (S, B, H, D), dtype=dtype)
    key_ = jax.random.normal(kk, (S, B, H, D), dtype=dtype)
    value = jax.random.normal(kv, (S, B, H, D), dtype=dtype)

    out = dot_product_attention(query, key_, value)
    out = jax.block_until_ready(out)

    ref = _reference_attention(query, key_, value)
    assert out.shape == (S, B, H * D), out.shape
    err = jnp.max(jnp.abs(out.astype(jnp.float32) - ref.astype(jnp.float32)))
    assert float(err) < 5e-2, f"max abs err {float(err)}"

    # TODO(synk): attention_dropout (default 0.0), activation checkpointing and
    # TP/sequence-parallel plumbing from the PyTorch module are not modeled.
    print("KERNEL_OK")
</pallas_src>

<mosaic_0001>
module attributes {stable_mosaic.version = 11 : i64} {
  func.func @_flash_attention_kernel(%arg0: i32, %arg1: i32, %arg2: memref<1xi32, #tpu.memory_space<smem>>, %arg3: memref<1xi32, #tpu.memory_space<smem>>, %arg4: memref<16x128xbf16, #tpu.memory_space<vmem>>, %arg5: memref<16x128xbf16, #tpu.memory_space<vmem>>, %arg6: memref<16x128xbf16, #tpu.memory_space<vmem>>, %arg7: memref<16x128xbf16, #tpu.memory_space<vmem>>, %arg8: memref<4x16x32xbf16, #tpu.memory_space<vmem>>, %arg9: memref<16x4xf32, #tpu.memory_space<vmem>>, %arg10: memref<16x4xf32, #tpu.memory_space<vmem>>, %arg11: memref<16x128xf32, #tpu.memory_space<vmem>>) attributes {dimension_semantics = [#tpu.dimension_semantics<parallel>, #tpu.dimension_semantics<arbitrary>], iteration_bounds = array<i64: 2, 1>, scalar_prefetch = 2 : i64, scratch_operands = 4 : i64, tpu.core_type = #tpu.core_type<tc>, window_params = [{transform_indices = @transform_0, window_bounds = array<i64: 16, 128>}, {transform_indices = @transform_1, window_bounds = array<i64: 16, 128>}, {transform_indices = @transform_2, window_bounds = array<i64: 16, 128>}, {transform_indices = @transform_3, window_bounds = array<i64: 16, 128>}]} {
    %0 = arith.index_cast %arg1 : i32 to index
    %1 = memref.load %arg2[%0] : memref<1xi32, #tpu.memory_space<smem>>
    %2 = arith.index_cast %arg1 : i32 to index
    %3 = memref.load %arg3[%2] : memref<1xi32, #tpu.memory_space<smem>>
    %c0_i32 = arith.constant 0 : i32
    %4 = arith.cmpi eq, %3, %c0_i32 : i32
    %5 = arith.extui %4 : i1 to i32
    %c0_i32_0 = arith.constant 0 : i32
    %6 = arith.cmpi ne, %5, %c0_i32_0 : i32
    scf.if %6 {
      %cst = arith.constant -1.000000e+30 : f32
      %21 = vector.broadcast %cst : f32 to vector<16x4xf32>
      %c0 = arith.constant 0 : index
      %c0_8 = arith.constant 0 : index
      %22 = vector.load %arg9[%c0, %c0_8] : memref<16x4xf32, #tpu.memory_space<vmem>>, vector<16x4xf32>
      tpu.vector_store %arg9[%c0, %c0_8], %21 {strides = array<i32>} : memref<16x4xf32, #tpu.memory_space<vmem>>, vector<16x4xf32>,
      %cst_9 = arith.constant 0.000000e+00 : f32
      %23 = vector.broadcast %cst_9 : f32 to vector<16x4xf32>
      %c0_10 = arith.constant 0 : index
      %c0_11 = arith.constant 0 : index
      %24 = vector.load %arg10[%c0_10, %c0_11] : memref<16x4xf32, #tpu.memory_space<vmem>>, vector<16x4xf32>
      tpu.vector_store %arg10[%c0_10, %c0_11], %23 {strides = array<i32>} : memref<16x4xf32, #tpu.memory_space<vmem>>, vector<16x4xf32>,
      %cst_12 = arith.constant 0.000000e+00 : f32
      %25 = vector.broadcast %cst_12 : f32 to vector<16x128xf32>
      %c0_13 = arith.constant 0 : index
      %c0_14 = arith.constant 0 : index
      %26 = vector.load %arg11[%c0_13, %c0_14] : memref<16x128xf32, #tpu.memory_space<vmem>>, vector<16x128xf32>
      tpu.vector_store %arg11[%c0_13, %c0_14], %25 {strides = array<i32>} : memref<16x128xf32, #tpu.memory_space<vmem>>, vector<16x128xf32>,
      %c0_15 = arith.constant 0 : index
      %c0_16 = arith.constant 0 : index
      %27 = vector.load %arg4[%c0_15, %c0_16] : memref<16x128xbf16, #tpu.memory_space<vmem>>, vector<16x128xbf16>
      %cst_17 = arith.constant 1.767580e-01 : bf16
      %28 = vector.broadcast %cst_17 : bf16 to vector<16x128xbf16>
      %29 = arith.mulf %27, %28 : vector<16x128xbf16>
      %30 = vector.extract_strided_slice %29 {offsets = [0, 0], sizes = [16, 32], strides = [1, 1]} : vector<16x128xbf16> to vector<16x32xbf16>
      %c0_18 = arith.constant 0 : index
      %c0_19 = arith.constant 0 : index
      %c0_20 = arith.constant 0 : index
      %31 = vector.load %arg8[%c0_18, %c0_19, %c0_20] : memref<4x16x32xbf16, #tpu.memory_space<vmem>>, vector<1x16x32xbf16>
      %32 = vector.shape_cast %31 : vector<1x16x32xbf16> to vector<16x32xbf16>
      %33 = vector.shape_cast %30 : vector<16x32xbf16> to vector<1x16x32xbf16>
      tpu.vector_store %arg8[%c0_18, %c0_19, %c0_20], %33 {strides = array<i32>} : memref<4x16x32xbf16, #tpu.memory_space<vmem>>, vector<1x16x32xbf16>,
      %34 = vector.extract_strided_slice %29 {offsets = [0, 32], sizes = [16, 32], strides = [1, 1]} : vector<16x128xbf16> to vector<16x32xbf16>
      %c1 = arith.constant 1 : index
      %c0_21 = arith.constant 0 : index
      %c0_22 = arith.constant 0 : index
      %35 = vector.load %arg8[%c1, %c0_21, %c0_22] : memref<4x16x32xbf16, #tpu.memory_space<vmem>>, vector<1x16x32xbf16>
      %36 = vector.shape_cast %35 : vector<1x16x32xbf16> to vector<16x32xbf16>
      %37 = vector.shape_cast %34 : vector<16x32xbf16> to vector<1x16x32xbf16>
      tpu.vector_store %arg8[%c1, %c0_21, %c0_22], %37 {strides = array<i32>} : memref<4x16x32xbf16, #tpu.memory_space<vmem>>, vector<1x16x32xbf16>,
      %38 = vector.extract_strided_slice %29 {offsets = [0, 64], sizes = [16, 32], strides = [1, 1]} : vector<16x128xbf16> to vector<16x32xbf16>
      %c2 = arith.constant 2 : index
      %c0_23 = arith.constant 0 : index
      %c0_24 = arith.constant 0 : index
      %39 = vector.load %arg8[%c2, %c0_23, %c0_24] : memref<4x16x32xbf16, #tpu.memory_space<vmem>>, vector<1x16x32xbf16>
      %40 = vector.shape_cast %39 : vector<1x16x32xbf16> to vector<16x32xbf16>
      %41 = vector.shape_cast %38 : vector<16x32xbf16> to vector<1x16x32xbf16>
      tpu.vector_store %arg8[%c2, %c0_23, %c0_24], %41 {strides = array<i32>} : memref<4x16x32xbf16, #tpu.memory_space<vmem>>, vector<1x16x32xbf16>,
      %42 = vector.extract_strided_slice %29 {offsets = [0, 96], sizes = [16, 32], strides = [1, 1]} : vector<16x128xbf16> to vector<16x32xbf16>
      %c3 = arith.constant 3 : index
      %c0_25 = arith.constant 0 : index
      %c0_26 = arith.constant 0 : index
      %43 = vector.load %arg8[%c3, %c0_25, %c0_26] : memref<4x16x32xbf16, #tpu.memory_space<vmem>>, vector<1x16x32xbf16>
      %44 = vector.shape_cast %43 : vector<1x16x32xbf16> to vector<16x32xbf16>
      %45 = vector.shape_cast %42 : vector<16x32xbf16> to vector<1x16x32xbf16>
      tpu.vector_store %arg8[%c3, %c0_25, %c0_26], %45 {strides = array<i32>} : memref<4x16x32xbf16, #tpu.memory_space<vmem>>, vector<1x16x32xbf16>,
    } else {
    }
    %c1_i32 = arith.constant 1 : i32
    %7 = arith.muli %1, %c1_i32 : i32
    %8 = arith.cmpi sge, %3, %7 : i32
    %true = arith.constant true
    %9 = arith.xori %8, %true : i1
    %10 = arith.extui %9 : i1 to i32
    %c0_i32_1 = arith.constant 0 : i32
    %11 = arith.cmpi ne, %10, %c0_i32_1 : i32
    scf.if %11 {
      %c0 = arith.constant 0 : index
      %c0_8 = arith.constant 0 : index
      %21 = vector.load %arg5[%c0, %c0_8] : memref<16x128xbf16, #tpu.memory_space<vmem>>, vector<16x128xbf16>
      %c0_9 = arith.constant 0 : index
      %c0_10 = arith.constant 0 : index
      %22 = vector.load %arg6[%c0_9, %c0_10] : memref<16x128xbf16, #tpu.memory_space<vmem>>, vector<16x128xbf16>
      %c0_11 = arith.constant 0 : index
      %c0_12 = arith.constant 0 : index
      %23 = vector.load %arg9[%c0_11, %c0_12] : memref<16x4xf32, #tpu.memory_space<vmem>>, vector<16x4xf32>
      %c0_13 = arith.constant 0 : index
      %c0_14 = arith.constant 0 : index
      %24 = vector.load %arg10[%c0_13, %c0_14] : memref<16x4xf32, #tpu.memory_space<vmem>>, vector<16x4xf32>
      %c0_15 = arith.constant 0 : index
      %c0_16 = arith.constant 0 : index
      %c0_17 = arith.constant 0 : index
      %25 = vector.load %arg8[%c0_15, %c0_16, %c0_17] : memref<4x16x32xbf16, #tpu.memory_space<vmem>>, vector<1x16x32xbf16>
      %26 = vector.shape_cast %25 : vector<1x16x32xbf16> to vector<16x32xbf16>
      %27 = vector.extract_strided_slice %21 {offsets = [0, 0], sizes = [16, 32], strides = [1, 1]} : vector<16x128xbf16> to vector<16x32xbf16>
      %cst = arith.constant dense<0.000000e+00> : vector<16x16xf32>
      %28 = tpu.matmul %26, %27, %cst {dimension_numbers = #tpu.dot_dimension_numbers<[1], [1], [0], [0], [0, 0, 1, 0], [], []>} : vector<16x32xbf16>, vector<16x32xbf16>, vector<16x16xf32> -> vector<16x16xf32>
      %29 = vector.extract_strided_slice %23 {offsets = [0, 0], sizes = [16, 1], strides = [1, 1]} : vector<16x4xf32> to vector<16x1xf32>
      %cst_18 = arith.constant dense<0xFF800000> : vector<16xf32>
      %30 = vector.multi_reduction <maximumf>, %28, %cst_18 [1] : vector<16x16xf32> to vector<16xf32>
      %31 = vector.shape_cast %30 : vector<16xf32> to vector<16x1xf32>
      %32 = arith.maximumf %29, %31 : vector<16x1xf32>
      %33 = arith.subf %29, %32 : vector<16x1xf32>
      %34 = math.exp %33 : vector<16x1xf32>
      %35 = vector.broadcast %32 : vector<16x1xf32> to vector<16x16xf32>
      %36 = arith.subf %28, %35 : vector<16x16xf32>
      %37 = math.exp %36 : vector<16x16xf32>
      %cst_19 = arith.constant dense<0.000000e+00> : vector<16xf32>
      %38 = vector.multi_reduction <add>, %37, %cst_19 [1] : vector<16x16xf32> to vector<16xf32>
      %39 = vector.shape_cast %38 : vector<16xf32> to vector<16x1xf32>
      %40 = arith.truncf %37 : vector<16x16xf32> to vector<16x16xbf16>
      %41 = vector.extract_strided_slice %22 {offsets = [0, 0], sizes = [16, 32], strides = [1, 1]} : vector<16x128xbf16> to vector<16x32xbf16>
      %cst_20 = arith.constant dense<0.000000e+00> : vector<16x32xf32>
      %42 = tpu.matmul %40, %41, %cst_20 {dimension_numbers = #tpu.dot_dimension_numbers<[1], [0], [0], [1], [0, 0, 1, 1], [], []>} : vector<16x16xbf16>, vector<16x32xbf16>, vector<16x32xf32> -> vector<16x32xf32>
      %c1 = arith.constant 1 : index
      %c0_21 = arith.constant 0 : index
      %c0_22 = arith.constant 0 : index
      %43 = vector.load %arg8[%c1, %c0_21, %c0_22] : memref<4x16x32xbf16, #tpu.memory_space<vmem>>, vector<1x16x32xbf16>
      %44 = vector.shape_cast %43 : vector<1x16x32xbf16> to vector<16x32xbf16>
      %45 = vector.extract_strided_slice %21 {offsets = [0, 32], sizes = [16, 32], strides = [1, 1]} : vector<16x128xbf16> to vector<16x32xbf16>
      %cst_23 = arith.constant dense<0.000000e+00> : vector<16x16xf32>
      %46 = tpu.matmul %44, %45, %cst_23 {dimension_numbers = #tpu.dot_dimension_numbers<[1], [1], [0], [0], [0, 0, 1, 0], [], []>} : vector<16x32xbf16>, vector<16x32xbf16>, vector<16x16xf32> -> vector<16x16xf32>
      %47 = vector.extract_strided_slice %23 {offsets = [0, 1], sizes = [16, 1], strides = [1, 1]} : vector<16x4xf32> to vector<16x1xf32>
      %cst_24 = arith.constant dense<0xFF800000> : vector<16xf32>
      %48 = vector.multi_reduction <maximumf>, %46, %cst_24 [1] : vector<16x16xf32> to vector<16xf32>
      %49 = vector.shape_cast %48 : vector<16xf32> to vector<16x1xf32>
      %50 = arith.maximumf %47, %49 : vector<16x1xf32>
      %51 = arith.subf %47, %50 : vector<16x1xf32>
      %52 = math.exp %51 : vector<16x1xf32>
      %53 = vector.broadcast %50 : vector<16x1xf32> to vector<16x16xf32>
      %54 = arith.subf %46, %53 : vector<16x16xf32>
      %55 = math.exp %54 : vector<16x16xf32>
      %cst_25 = arith.constant dense<0.000000e+00> : vector<16xf32>
      %56 = vector.multi_reduction <add>, %55, %cst_25 [1] : vector<16x16xf32> to vector<16xf32>
      %57 = vector.shape_cast %56 : vector<16xf32> to vector<16x1xf32>
      %58 = arith.truncf %55 : vector<16x16xf32> to vector<16x16xbf16>
      %59 = vector.extract_strided_slice %22 {offsets = [0, 32], sizes = [16, 32], strides = [1, 1]} : vector<16x128xbf16> to vector<16x32xbf16>
      %cst_26 = arith.constant dense<0.000000e+00> : vector<16x32xf32>
      %60 = tpu.matmul %58, %59, %cst_26 {dimension_numbers = #tpu.dot_dimension_numbers<[1], [0], [0], [1], [0, 0, 1, 1], [], []>} : vector<16x16xbf16>, vector<16x32xbf16>, vector<16x32xf32> -> vector<16x32xf32>
      %c2 = arith.constant 2 : index
      %c0_27 = arith.constant 0 : index
      %c0_28 = arith.constant 0 : index
      %61 = vector.load %arg8[%c2, %c0_27, %c0_28] : memref<4x16x32xbf16, #tpu.memory_space<vmem>>, vector<1x16x32xbf16>
      %62 = vector.shape_cast %61 : vector<1x16x32xbf16> to vector<16x32xbf16>
      %63 = vector.extract_strided_slice %21 {offsets = [0, 64], sizes = [16, 32], strides = [1, 1]} : vector<16x128xbf16> to vector<16x32xbf16>
      %cst_29 = arith.constant dense<0.000000e+00> : vector<16x16xf32>
      %64 = tpu.matmul %62, %63, %cst_29 {dimension_numbers = #tpu.dot_dimension_numbers<[1], [1], [0], [0], [0, 0, 1, 0], [], []>} : vector<16x32xbf16>, vector<16x32xbf16>, vector<16x16xf32> -> vector<16x16xf32>
      %65 = vector.extract_strided_slice %23 {offsets = [0, 2], sizes = [16, 1], strides = [1, 1]} : vector<16x4xf32> to vector<16x1xf32>
      %cst_30 = arith.constant dense<0xFF800000> : vector<16xf32>
      %66 = vector.multi_reduction <maximumf>, %64, %cst_30 [1] : vector<16x16xf32> to vector<16xf32>
      %67 = vector.shape_cast %66 : vector<16xf32> to vector<16x1xf32>
      %68 = arith.maximumf %65, %67 : vector<16x1xf32>
      %69 = arith.subf %65, %68 : vector<16x1xf32>
      %70 = math.exp %69 : vector<16x1xf32>
      %71 = vector.broadcast %68 : vector<16x1xf32> to vector<16x16xf32>
      %72 = arith.subf %64, %71 : vector<16x16xf32>
      %73 = math.exp %72 : vector<16x16xf32>
      %cst_31 = arith.constant dense<0.000000e+00> : vector<16xf32>
      %74 = vector.multi_reduction <add>, %73, %cst_31 [1] : vector<16x16xf32> to vector<16xf32>
      %75 = vector.shape_cast %74 : vector<16xf32> to vector<16x1xf32>
      %76 = arith.truncf %73 : vector<16x16xf32> to vector<16x16xbf16>
      %77 = vector.extract_strided_slice %22 {offsets = [0, 64], sizes = [16, 32], strides = [1, 1]} : vector<16x128xbf16> to vector<16x32xbf16>
      %cst_32 = arith.constant dense<0.000000e+00> : vector<16x32xf32>
      %78 = tpu.matmul %76, %77, %cst_32 {dimension_numbers = #tpu.dot_dimension_numbers<[1], [0], [0], [1], [0, 0, 1, 1], [], []>} : vector<16x16xbf16>, vector<16x32xbf16>, vector<16x32xf32> -> vector<16x32xf32>
      %c3 = arith.constant 3 : index
      %c0_33 = arith.constant 0 : index
      %c0_34 = arith.constant 0 : index
      %79 = vector.load %arg8[%c3, %c0_33, %c0_34] : memref<4x16x32xbf16, #tpu.memory_space<vmem>>, vector<1x16x32xbf16>
      %80 = vector.shape_cast %79 : vector<1x16x32xbf16> to vector<16x32xbf16>
      %81 = vector.extract_strided_slice %21 {offsets = [0, 96], sizes = [16, 32], strides = [1, 1]} : vector<16x128xbf16> to vector<16x32xbf16>
      %cst_35 = arith.constant dense<0.000000e+00> : vector<16x16xf32>
      %82 = tpu.matmul %80, %81, %cst_35 {dimension_numbers = #tpu.dot_dimension_numbers<[1], [1], [0], [0], [0, 0, 1, 0], [], []>} : vector<16x32xbf16>, vector<16x32xbf16>, vector<16x16xf32> -> vector<16x16xf32>
      %83 = vector.extract_strided_slice %23 {offsets = [0, 3], sizes = [16, 1], strides = [1, 1]} : vector<16x4xf32> to vector<16x1xf32>
      %cst_36 = arith.constant dense<0xFF800000> : vector<16xf32>
      %84 = vector.multi_reduction <maximumf>, %82, %cst_36 [1] : vector<16x16xf32> to vector<16xf32>
      %85 = vector.shape_cast %84 : vector<16xf32> to vector<16x1xf32>
      %86 = arith.maximumf %83, %85 : vector<16x1xf32>
      %87 = arith.subf %83, %86 : vector<16x1xf32>
      %88 = math.exp %87 : vector<16x1xf32>
      %89 = vector.broadcast %86 : vector<16x1xf32> to vector<16x16xf32>
      %90 = arith.subf %82, %89 : vector<16x16xf32>
      %91 = math.exp %90 : vector<16x16xf32>
      %cst_37 = arith.constant dense<0.000000e+00> : vector<16xf32>
      %92 = vector.multi_reduction <add>, %91, %cst_37 [1] : vector<16x16xf32> to vector<16xf32>
      %93 = vector.shape_cast %92 : vector<16xf32> to vector<16x1xf32>
      %94 = arith.truncf %91 : vector<16x16xf32> to vector<16x16xbf16>
      %95 = vector.extract_strided_slice %22 {offsets = [0, 96], sizes = [16, 32], strides = [1, 1]} : vector<16x128xbf16> to vector<16x32xbf16>
      %cst_38 = arith.constant dense<0.000000e+00> : vector<16x32xf32>
      %96 = tpu.matmul %94, %95, %cst_38 {dimension_numbers = #tpu.dot_dimension_numbers<[1], [0], [0], [1], [0, 0, 1, 1], [], []>} : vector<16x16xbf16>, vector<16x32xbf16>, vector<16x32xf32> -> vector<16x32xf32>
      %97 = tpu.concatenate %32, %50, %68, %86 in 1 : vector<16x1xf32>, vector<16x1xf32>, vector<16x1xf32>, vector<16x1xf32> -> vector<16x4xf32>
      %c0_39 = arith.constant 0 : index
      %c0_40 = arith.constant 0 : index
      %98 = vector.load %arg9[%c0_39, %c0_40] : memref<16x4xf32, #tpu.memory_space<vmem>>, vector<16x4xf32>
      tpu.vector_store %arg9[%c0_39, %c0_40], %97 {strides = array<i32>} : memref<16x4xf32, #tpu.memory_space<vmem>>, vector<16x4xf32>,
      %99 = tpu.concatenate %34, %52, %70, %88 in 1 : vector<16x1xf32>, vector<16x1xf32>, vector<16x1xf32>, vector<16x1xf32> -> vector<16x4xf32>
      %100 = arith.mulf %99, %24 : vector<16x4xf32>
      %101 = tpu.concatenate %39, %57, %75, %93 in 1 : vector<16x1xf32>, vector<16x1xf32>, vector<16x1xf32>, vector<16x1xf32> -> vector<16x4xf32>
      %102 = arith.addf %100, %101 : vector<16x4xf32>
      %c0_41 = arith.constant 0 : index
      %c0_42 = arith.constant 0 : index
      %103 = vector.load %arg10[%c0_41, %c0_42] : memref<16x4xf32, #tpu.memory_space<vmem>>, vector<16x4xf32>
      tpu.vector_store %arg10[%c0_41, %c0_42], %102 {strides = array<i32>} : memref<16x4xf32, #tpu.memory_space<vmem>>, vector<16x4xf32>,
      %104 = vector.shape_cast %34 : vector<16x1xf32> to vector<16x1xf32>
      %105 = vector.broadcast %104 : vector<16x1xf32> to vector<16x32xf32>
      %106 = vector.shape_cast %52 : vector<16x1xf32> to vector<16x1xf32>
      %107 = vector.broadcast %106 : vector<16x1xf32> to vector<16x32xf32>
      %108 = vector.shape_cast %70 : vector<16x1xf32> to vector<16x1xf32>
      %109 = vector.broadcast %108 : vector<16x1xf32> to vector<16x32xf32>
      %110 = vector.shape_cast %88 : vector<16x1xf32> to vector<16x1xf32>
      %111 = vector.broadcast %110 : vector<16x1xf32> to vector<16x32xf32>
      %112 = tpu.concatenate %105, %107, %109, %111 in 1 : vector<16x32xf32>, vector<16x32xf32>, vector<16x32xf32>, vector<16x32xf32> -> vector<16x128xf32>
      %c0_43 = arith.constant 0 : index
      %c0_44 = arith.constant 0 : index
      %113 = vector.load %arg11[%c0_43, %c0_44] : memref<16x128xf32, #tpu.memory_space<vmem>>, vector<16x128xf32>
      %114 = arith.mulf %112, %113 : vector<16x128xf32>
      %115 = tpu.concatenate %42, %60, %78, %96 in 1 : vector<16x32xf32>, vector<16x32xf32>, vector<16x32xf32>, vector<16x32xf32> -> vector<16x128xf32>
      %116 = arith.addf %114, %115 : vector<16x128xf32>
      %c0_45 = arith.constant 0 : index
      %c0_46 = arith.constant 0 : index
      %117 = vector.load %arg11[%c0_45, %c0_46] : memref<16x128xf32, #tpu.memory_space<vmem>>, vector<16x128xf32>
      tpu.vector_store %arg11[%c0_45, %c0_46], %116 {strides = array<i32>} : memref<16x128xf32, #tpu.memory_space<vmem>>, vector<16x128xf32>,
    } else {
    }
    %12 = arith.extui %8 : i1 to i32
    %c0_i32_2 = arith.constant 0 : i32
    %13 = arith.cmpi ne, %12, %c0_i32_2 : i32
    scf.if %13 {
      %c0 = arith.constant 0 : index
      %c0_8 = arith.constant 0 : index
      %21 = vector.load %arg5[%c0, %c0_8] : memref<16x128xbf16, #tpu.memory_space<vmem>>, vector<16x128xbf16>
      %c0_9 = arith.constant 0 : index
      %c0_10 = arith.constant 0 : index
      %22 = vector.load %arg6[%c0_9, %c0_10] : memref<16x128xbf16, #tpu.memory_space<vmem>>, vector<16x128xbf16>
      %c0_11 = arith.constant 0 : index
      %c0_12 = arith.constant 0 : index
      %23 = vector.load %arg9[%c0_11, %c0_12] : memref<16x4xf32, #tpu.memory_space<vmem>>, vector<16x4xf32>
      %c0_13 = arith.constant 0 : index
      %c0_14 = arith.constant 0 : index
      %24 = vector.load %arg10[%c0_13, %c0_14] : memref<16x4xf32, #tpu.memory_space<vmem>>, vector<16x4xf32>
      %25 = tpu.iota {dimensions = array<i32: 0>} : vector<16x16xi32>
      %c16_i32 = arith.constant 16 : i32
      %26 = arith.muli %1, %c16_i32 : i32
      %27 = vector.broadcast %26 : i32 to vector<16x16xi32>
      %28 = arith.addi %25, %27 : vector<16x16xi32>
      %29 = tpu.iota {dimensions = array<i32: 1>} : vector<16x16xi32>
      %c16_i32_15 = arith.constant 16 : i32
      %30 = arith.muli %3, %c16_i32_15 : i32
      %31 = vector.broadcast %30 : i32 to vector<16x16xi32>
      %32 = arith.addi %29, %31 : vector<16x16xi32>
      %33 = arith.cmpi sge, %28, %32 : vector<16x16xi32>
      %c0_16 = arith.constant 0 : index
      %c0_17 = arith.constant 0 : index
      %c0_18 = arith.constant 0 : index
      %34 = vector.load %arg8[%c0_16, %c0_17, %c0_18] : memref<4x16x32xbf16, #tpu.memory_space<vmem>>, vector<1x16x32xbf16>
      %35 = vector.shape_cast %34 : vector<1x16x32xbf16> to vector<16x32xbf16>
      %36 = vector.extract_strided_slice %21 {offsets = [0, 0], sizes = [16, 32], strides = [1, 1]} : vector<16x128xbf16> to vector<16x32xbf16>
      %cst = arith.constant dense<0.000000e+00> : vector<16x16xf32>
      %37 = tpu.matmul %35, %36, %cst {dimension_numbers = #tpu.dot_dimension_numbers<[1], [1], [0], [0], [0, 0, 1, 0], [], []>} : vector<16x32xbf16>, vector<16x32xbf16>, vector<16x16xf32> -> vector<16x16xf32>
      %cst_19 = arith.constant -1.000000e+30 : f32
      %38 = vector.broadcast %cst_19 : f32 to vector<16x16xf32>
      %39 = arith.select %33, %37, %38 : vector<16x16xi1>, vector<16x16xf32>
      %40 = vector.extract_strided_slice %23 {offsets = [0, 0], sizes = [16, 1], strides = [1, 1]} : vector<16x4xf32> to vector<16x1xf32>
      %cst_20 = arith.constant dense<0xFF800000> : vector<16xf32>
      %41 = vector.multi_reduction <maximumf>, %39, %cst_20 [1] : vector<16x16xf32> to vector<16xf32>
      %42 = vector.shape_cast %41 : vector<16xf32> to vector<16x1xf32>
      %43 = arith.maximumf %40, %42 : vector<16x1xf32>
      %44 = arith.subf %40, %43 : vector<16x1xf32>
      %45 = math.exp %44 : vector<16x1xf32>
      %46 = vector.broadcast %43 : vector<16x1xf32> to vector<16x16xf32>
      %47 = arith.subf %39, %46 : vector<16x16xf32>
      %48 = math.exp %47 : vector<16x16xf32>
      %cst_21 = arith.constant dense<0.000000e+00> : vector<16xf32>
      %49 = vector.multi_reduction <add>, %48, %cst_21 [1] : vector<16x16xf32> to vector<16xf32>
      %50 = vector.shape_cast %49 : vector<16xf32> to vector<16x1xf32>
      %51 = arith.truncf %48 : vector<16x16xf32> to vector<16x16xbf16>
      %52 = vector.extract_strided_slice %22 {offsets = [0, 0], sizes = [16, 32], strides = [1, 1]} : vector<16x128xbf16> to vector<16x32xbf16>
      %cst_22 = arith.constant dense<0.000000e+00> : vector<16x32xf32>
      %53 = tpu.matmul %51, %52, %cst_22 {dimension_numbers = #tpu.dot_dimension_numbers<[1], [0], [0], [1], [0, 0, 1, 1], [], []>} : vector<16x16xbf16>, vector<16x32xbf16>, vector<16x32xf32> -> vector<16x32xf32>
      %c1 = arith.constant 1 : index
      %c0_23 = arith.constant 0 : index
      %c0_24 = arith.constant 0 : index
      %54 = vector.load %arg8[%c1, %c0_23, %c0_24] : memref<4x16x32xbf16, #tpu.memory_space<vmem>>, vector<1x16x32xbf16>
      %55 = vector.shape_cast %54 : vector<1x16x32xbf16> to vector<16x32xbf16>
      %56 = vector.extract_strided_slice %21 {offsets = [0, 32], sizes = [16, 32], strides = [1, 1]} : vector<16x128xbf16> to vector<16x32xbf16>
      %cst_25 = arith.constant dense<0.000000e+00> : vector<16x16xf32>
      %57 = tpu.matmul %55, %56, %cst_25 {dimension_numbers = #tpu.dot_dimension_numbers<[1], [1], [0], [0], [0, 0, 1, 0], [], []>} : vector<16x32xbf16>, vector<16x32xbf16>, vector<16x16xf32> -> vector<16x16xf32>
      %cst_26 = arith.constant -1.000000e+30 : f32
      %58 = vector.broadcast %cst_26 : f32 to vector<16x16xf32>
      %59 = arith.select %33, %57, %58 : vector<16x16xi1>, vector<16x16xf32>
      %60 = vector.extract_strided_slice %23 {offsets = [0, 1], sizes = [16, 1], strides = [1, 1]} : vector<16x4xf32> to vector<16x1xf32>
      %cst_27 = arith.constant dense<0xFF800000> : vector<16xf32>
      %61 = vector.multi_reduction <maximumf>, %59, %cst_27 [1] : vector<16x16xf32> to vector<16xf32>
      %62 = vector.shape_cast %61 : vector<16xf32> to vector<16x1xf32>
      %63 = arith.maximumf %60, %62 : vector<16x1xf32>
      %64 = arith.subf %60, %63 : vector<16x1xf32>
      %65 = math.exp %64 : vector<16x1xf32>
      %66 = vector.broadcast %63 : vector<16x1xf32> to vector<16x16xf32>
      %67 = arith.subf %59, %66 : vector<16x16xf32>
      %68 = math.exp %67 : vector<16x16xf32>
      %cst_28 = arith.constant dense<0.000000e+00> : vector<16xf32>
      %69 = vector.multi_reduction <add>, %68, %cst_28 [1] : vector<16x16xf32> to vector<16xf32>
      %70 = vector.shape_cast %69 : vector<16xf32> to vector<16x1xf32>
      %71 = arith.truncf %68 : vector<16x16xf32> to vector<16x16xbf16>
      %72 = vector.extract_strided_slice %22 {offsets = [0, 32], sizes = [16, 32], strides = [1, 1]} : vector<16x128xbf16> to vector<16x32xbf16>
      %cst_29 = arith.constant dense<0.000000e+00> : vector<16x32xf32>
      %73 = tpu.matmul %71, %72, %cst_29 {dimension_numbers = #tpu.dot_dimension_numbers<[1], [0], [0], [1], [0, 0, 1, 1], [], []>} : vector<16x16xbf16>, vector<16x32xbf16>, vector<16x32xf32> -> vector<16x32xf32>
      %c2 = arith.constant 2 : index
      %c0_30 = arith.constant 0 : index
      %c0_31 = arith.constant 0 : index
      %74 = vector.load %arg8[%c2, %c0_30, %c0_31] : memref<4x16x32xbf16, #tpu.memory_space<vmem>>, vector<1x16x32xbf16>
      %75 = vector.shape_cast %74 : vector<1x16x32xbf16> to vector<16x32xbf16>
      %76 = vector.extract_strided_slice %21 {offsets = [0, 64], sizes = [16, 32], strides = [1, 1]} : vector<16x128xbf16> to vector<16x32xbf16>
      %cst_32 = arith.constant dense<0.000000e+00> : vector<16x16xf32>
      %77 = tpu.matmul %75, %76, %cst_32 {dimension_numbers = #tpu.dot_dimension_numbers<[1], [1], [0], [0], [0, 0, 1, 0], [], []>} : vector<16x32xbf16>, vector<16x32xbf16>, vector<16x16xf32> -> vector<16x16xf32>
      %cst_33 = arith.constant -1.000000e+30 : f32
      %78 = vector.broadcast %cst_33 : f32 to vector<16x16xf32>
      %79 = arith.select %33, %77, %78 : vector<16x16xi1>, vector<16x16xf32>
      %80 = vector.extract_strided_slice %23 {offsets = [0, 2], sizes = [16, 1], strides = [1, 1]} : vector<16x4xf32> to vector<16x1xf32>
      %cst_34 = arith.constant dense<0xFF800000> : vector<16xf32>
      %81 = vector.multi_reduction <maximumf>, %79, %cst_34 [1] : vector<16x16xf32> to vector<16xf32>
      %82 = vector.shape_cast %81 : vector<16xf32> to vector<16x1xf32>
      %83 = arith.maximumf %80, %82 : vector<16x1xf32>
      %84 = arith.subf %80, %83 : vector<16x1xf32>
      %85 = math.exp %84 : vector<16x1xf32>
      %86 = vector.broadcast %83 : vector<16x1xf32> to vector<16x16xf32>
      %87 = arith.subf %79, %86 : vector<16x16xf32>
      %88 = math.exp %87 : vector<16x16xf32>
      %cst_35 = arith.constant dense<0.000000e+00> : vector<16xf32>
      %89 = vector.multi_reduction <add>, %88, %cst_35 [1] : vector<16x16xf32> to vector<16xf32>
      %90 = vector.shape_cast %89 : vector<16xf32> to vector<16x1xf32>
      %91 = arith.truncf %88 : vector<16x16xf32> to vector<16x16xbf16>
      %92 = vector.extract_strided_slice %22 {offsets = [0, 64], sizes = [16, 32], strides = [1, 1]} : vector<16x128xbf16> to vector<16x32xbf16>
      %cst_36 = arith.constant dense<0.000000e+00> : vector<16x32xf32>
      %93 = tpu.matmul %91, %92, %cst_36 {dimension_numbers = #tpu.dot_dimension_numbers<[1], [0], [0], [1], [0, 0, 1, 1], [], []>} : vector<16x16xbf16>, vector<16x32xbf16>, vector<16x32xf32> -> vector<16x32xf32>
      %c3 = arith.constant 3 : index
      %c0_37 = arith.constant 0 : index
      %c0_38 = arith.constant 0 : index
      %94 = vector.load %arg8[%c3, %c0_37, %c0_38] : memref<4x16x32xbf16, #tpu.memory_space<vmem>>, vector<1x16x32xbf16>
      %95 = vector.shape_cast %94 : vector<1x16x32xbf16> to vector<16x32xbf16>
      %96 = vector.extract_strided_slice %21 {offsets = [0, 96], sizes = [16, 32], strides = [1, 1]} : vector<16x128xbf16> to vector<16x32xbf16>
      %cst_39 = arith.constant dense<0.000000e+00> : vector<16x16xf32>
      %97 = tpu.matmul %95, %96, %cst_39 {dimension_numbers = #tpu.dot_dimension_numbers<[1], [1], [0], [0], [0, 0, 1, 0], [], []>} : vector<16x32xbf16>, vector<16x32xbf16>, vector<16x16xf32> -> vector<16x16xf32>
      %cst_40 = arith.constant -1.000000e+30 : f32
      %98 = vector.broadcast %cst_40 : f32 to vector<16x16xf32>
      %99 = arith.select %33, %97, %98 : vector<16x16xi1>, vector<16x16xf32>
      %100 = vector.extract_strided_slice %23 {offsets = [0, 3], sizes = [16, 1], strides = [1, 1]} : vector<16x4xf32> to vector<16x1xf32>
      %cst_41 = arith.constant dense<0xFF800000> : vector<16xf32>
      %101 = vector.multi_reduction <maximumf>, %99, %cst_41 [1] : vector<16x16xf32> to vector<16xf32>
      %102 = vector.shape_cast %101 : vector<16xf32> to vector<16x1xf32>
      %103 = arith.maximumf %100, %102 : vector<16x1xf32>
      %104 = arith.subf %100, %103 : vector<16x1xf32>
      %105 = math.exp %104 : vector<16x1xf32>
      %106 = vector.broadcast %103 : vector<16x1xf32> to vector<16x16xf32>
      %107 = arith.subf %99, %106 : vector<16x16xf32>
      %108 = math.exp %107 : vector<16x16xf32>
      %cst_42 = arith.constant dense<0.000000e+00> : vector<16xf32>
      %109 = vector.multi_reduction <add>, %108, %cst_42 [1] : vector<16x16xf32> to vector<16xf32>
      %110 = vector.shape_cast %109 : vector<16xf32> to vector<16x1xf32>
      %111 = arith.truncf %108 : vector<16x16xf32> to vector<16x16xbf16>
      %112 = vector.extract_strided_slice %22 {offsets = [0, 96], sizes = [16, 32], strides = [1, 1]} : vector<16x128xbf16> to vector<16x32xbf16>
      %cst_43 = arith.constant dense<0.000000e+00> : vector<16x32xf32>
      %113 = tpu.matmul %111, %112, %cst_43 {dimension_numbers = #tpu.dot_dimension_numbers<[1], [0], [0], [1], [0, 0, 1, 1], [], []>} : vector<16x16xbf16>, vector<16x32xbf16>, vector<16x32xf32> -> vector<16x32xf32>
      %114 = tpu.concatenate %43, %63, %83, %103 in 1 : vector<16x1xf32>, vector<16x1xf32>, vector<16x1xf32>, vector<16x1xf32> -> vector<16x4xf32>
      %c0_44 = arith.constant 0 : index
      %c0_45 = arith.constant 0 : index
      %115 = vector.load %arg9[%c0_44, %c0_45] : memref<16x4xf32, #tpu.memory_space<vmem>>, vector<16x4xf32>
      tpu.vector_store %arg9[%c0_44, %c0_45], %114 {strides = array<i32>} : memref<16x4xf32, #tpu.memory_space<vmem>>, vector<16x4xf32>,
      %116 = tpu.concatenate %45, %65, %85, %105 in 1 : vector<16x1xf32>, vector<16x1xf32>, vector<16x1xf32>, vector<16x1xf32> -> vector<16x4xf32>
      %117 = arith.mulf %116, %24 : vector<16x4xf32>
      %118 = tpu.concatenate %50, %70, %90, %110 in 1 : vector<16x1xf32>, vector<16x1xf32>, vector<16x1xf32>, vector<16x1xf32> -> vector<16x4xf32>
      %119 = arith.addf %117, %118 : vector<16x4xf32>
      %c0_46 = arith.constant 0 : index
      %c0_47 = arith.constant 0 : index
      %120 = vector.load %arg10[%c0_46, %c0_47] : memref<16x4xf32, #tpu.memory_space<vmem>>, vector<16x4xf32>
      tpu.vector_store %arg10[%c0_46, %c0_47], %119 {strides = array<i32>} : memref<16x4xf32, #tpu.memory_space<vmem>>, vector<16x4xf32>,
      %121 = vector.shape_cast %45 : vector<16x1xf32> to vector<16x1xf32>
      %122 = vector.broadcast %121 : vector<16x1xf32> to vector<16x32xf32>
      %123 = vector.shape_cast %65 : vector<16x1xf32> to vector<16x1xf32>
      %124 = vector.broadcast %123 : vector<16x1xf32> to vector<16x32xf32>
      %125 = vector.shape_cast %85 : vector<16x1xf32> to vector<16x1xf32>
      %126 = vector.broadcast %125 : vector<16x1xf32> to vector<16x32xf32>
      %127 = vector.shape_cast %105 : vector<16x1xf32> to vector<16x1xf32>
      %128 = vector.broadcast %127 : vector<16x1xf32> to vector<16x32xf32>
      %129 = tpu.concatenate %122, %124, %126, %128 in 1 : vector<16x32xf32>, vector<16x32xf32>, vector<16x32xf32>, vector<16x32xf32> -> vector<16x128xf32>
      %c0_48 = arith.constant 0 : index
      %c0_49 = arith.constant 0 : index
      %130 = vector.load %arg11[%c0_48, %c0_49] : memref<16x128xf32, #tpu.memory_space<vmem>>, vector<16x128xf32>
      %131 = arith.mulf %129, %130 : vector<16x128xf32>
      %132 = tpu.concatenate %53, %73, %93, %113 in 1 : vector<16x32xf32>, vector<16x32xf32>, vector<16x32xf32>, vector<16x32xf32> -> vector<16x128xf32>
      %133 = arith.addf %131, %132 : vector<16x128xf32>
      %c0_50 = arith.constant 0 : index
      %c0_51 = arith.constant 0 : index
      %134 = vector.load %arg11[%c0_50, %c0_51] : memref<16x128xf32, #tpu.memory_space<vmem>>, vector<16x128xf32>
      tpu.vector_store %arg11[%c0_50, %c0_51], %133 {strides = array<i32>} : memref<16x128xf32, #tpu.memory_space<vmem>>, vector<16x128xf32>,
    } else {
    }
    %c1_i32_3 = arith.constant 1 : i32
    %14 = arith.addi %1, %c1_i32_3 : i32
    %c1_i32_4 = arith.constant 1 : i32
    %15 = arith.muli %14, %c1_i32_4 : i32
    %c1_i32_5 = arith.constant 1 : i32
    %16 = arith.subi %15, %c1_i32_5 : i32
    %c0_i32_6 = arith.constant 0 : i32
    %17 = arith.minsi %16, %c0_i32_6 : i32
    %18 = arith.cmpi eq, %3, %17 : i32
    %19 = arith.extui %18 : i1 to i32
    %c0_i32_7 = arith.constant 0 : i32
    %20 = arith.cmpi ne, %19, %c0_i32_7 : i32
    scf.if %20 {
      %c0 = arith.constant 0 : index
      %c0_8 = arith.constant 0 : index
      %21 = vector.load %arg10[%c0, %c0_8] : memref<16x4xf32, #tpu.memory_space<vmem>>, vector<16x4xf32>
      %22 = tpu.reciprocal %21 {approx = true} : vector<16x4xf32> -> vector<16x4xf32>
      %23 = vector.extract_strided_slice %22 {offsets = [0, 0], sizes = [16, 1], strides = [1, 1]} : vector<16x4xf32> to vector<16x1xf32>
      %24 = vector.shape_cast %23 : vector<16x1xf32> to vector<16x1xf32>
      %25 = vector.broadcast %24 : vector<16x1xf32> to vector<16x32xf32>
      %26 = vector.extract_strided_slice %22 {offsets = [0, 1], sizes = [16, 1], strides = [1, 1]} : vector<16x4xf32> to vector<16x1xf32>
      %27 = vector.shape_cast %26 : vector<16x1xf32> to vector<16x1xf32>
      %28 = vector.broadcast %27 : vector<16x1xf32> to vector<16x32xf32>
      %29 = vector.extract_strided_slice %22 {offsets = [0, 2], sizes = [16, 1], strides = [1, 1]} : vector<16x4xf32> to vector<16x1xf32>
      %30 = vector.shape_cast %29 : vector<16x1xf32> to vector<16x1xf32>
      %31 = vector.broadcast %30 : vector<16x1xf32> to vector<16x32xf32>
      %32 = vector.extract_strided_slice %22 {offsets = [0, 3], sizes = [16, 1], strides = [1, 1]} : vector<16x4xf32> to vector<16x1xf32>
      %33 = vector.shape_cast %32 : vector<16x1xf32> to vector<16x1xf32>
      %34 = vector.broadcast %33 : vector<16x1xf32> to vector<16x32xf32>
      %35 = tpu.concatenate %25, %28, %31, %34 in 1 : vector<16x32xf32>, vector<16x32xf32>, vector<16x32xf32>, vector<16x32xf32> -> vector<16x128xf32>
      %c0_9 = arith.constant 0 : index
      %c0_10 = arith.constant 0 : index
      %36 = vector.load %arg11[%c0_9, %c0_10] : memref<16x128xf32, #tpu.memory_space<vmem>>, vector<16x128xf32>
      %37 = arith.mulf %36, %35 : vector<16x128xf32>
      %38 = arith.truncf %37 : vector<16x128xf32> to vector<16x128xbf16>
      %c0_11 = arith.constant 0 : index
      %c0_12 = arith.constant 0 : index
      %39 = vector.load %arg7[%c0_11, %c0_12] : memref<16x128xbf16, #tpu.memory_space<vmem>>, vector<16x128xbf16>
      tpu.vector_store %arg7[%c0_11, %c0_12], %38 {strides = array<i32>} : memref<16x128xbf16, #tpu.memory_space<vmem>>, vector<16x128xbf16>,
    } else {
    }
    return
  }
  func.func @transform_0(%arg0: i32, %arg1: i32, %arg2: memref<1xi32, #tpu.memory_space<smem>>, %arg3: memref<1xi32, #tpu.memory_space<smem>>) -> (i32, i32) {
    %0 = arith.index_cast %arg1 : i32 to index
    %1 = memref.load %arg2[%0] : memref<1xi32, #tpu.memory_space<smem>>
    %c0_i32 = arith.constant 0 : i32
    return %1, %arg0 : i32, i32
  }
  func.func @transform_1(%arg0: i32, %arg1: i32, %arg2: memref<1xi32, #tpu.memory_space<smem>>, %arg3: memref<1xi32, #tpu.memory_space<smem>>) -> (i32, i32) {
    %0 = arith.index_cast %arg1 : i32 to index
    %1 = memref.load %arg3[%0] : memref<1xi32, #tpu.memory_space<smem>>
    %c0_i32 = arith.constant 0 : i32
    return %1, %arg0 : i32, i32
  }
  func.func @transform_2(%arg0: i32, %arg1: i32, %arg2: memref<1xi32, #tpu.memory_space<smem>>, %arg3: memref<1xi32, #tpu.memory_space<smem>>) -> (i32, i32) {
    %0 = arith.index_cast %arg1 : i32 to index
    %1 = memref.load %arg3[%0] : memref<1xi32, #tpu.memory_space<smem>>
    %c0_i32 = arith.constant 0 : i32
    return %1, %arg0 : i32, i32
  }
  func.func @transform_3(%arg0: i32, %arg1: i32, %arg2: memref<1xi32, #tpu.memory_space<smem>>, %arg3: memref<1xi32, #tpu.memory_space<smem>>) -> (i32, i32) {
    %0 = arith.index_cast %arg1 : i32 to index
    %1 = memref.load %arg2[%0] : memref<1xi32, #tpu.memory_space<smem>>
    %c0_i32 = arith.constant 0 : i32
    return %1, %arg0 : i32, i32
  }
}

</mosaic_0001>

<bundles_post_ra>
// kernel: tpu_custom_call.1
= control target key start
LH: loop header
LB: loop body
LE: loop exit
PB: predicated region body
PF: predicated region fallthrough
CT: control target
= control target key end

     0   :  { %s3672_s0 = inlined_call_operand.<no memory space> [shape: s32[1], index: 0, kind: input, shape index: {}]   ;;  %s3673_s1 = inlined_call_operand.<no memory space> [shape: s32[1], index: 1, kind: input, shape index: {}]   ;;  %s3674_s2 = inlined_call_operand.hbm [shape: bf16[16,256], index: 2, kind: input, shape index: {}]   ;;  %s3675_s3 = inlined_call_operand.hbm [shape: bf16[16,256], index: 3, kind: input, shape index: {}]   ;;  %s3676_s4 = inlined_call_operand.hbm [shape: bf16[16,256], index: 4, kind: input, shape index: {}]   ;;  %s3677_s5 = inlined_call_operand.hbm [shape: bf16[16,256], index: 5, kind: output, shape index: {}]  }
   0x1   :  { %3703 = sst [smem:[#allocation30_spill]] %s3674_s2 }
   0x2   :  { %3704 = sst [smem:[#allocation31_spill]] %s3675_s3 }
   0x3   :  { %3705 = sst [smem:[#allocation32_spill]] %s3677_s5 }
   0x4   :  { %10 = sst [smem:[#allocation7]] %s3672_s0 }
   0x5   :  { %11 = sst [smem:[#allocation8]] %s3673_s1 }
   0x6   :  { %12 = vsyncpa [#allocation10], 0 }
   0x7   :  { %14 = vsyncpa [#allocation10 + $0x1], 0 }
   0x8   :  { %15 = vsyncpa [#allocation13], 0 }
   0x9   :  { %17 = vsyncpa [#allocation13 + $0x1], 0 }
   0xa   :  { %18 = vsyncpa [#allocation11], 0 }
   0xb   :  { %20 = vsyncpa [#allocation11 + $0x1], 0  ;;  %s2744_s22 = smov 0   ;;  %s2746_s23 = smov 0  }
   0xc   :  { %s2748_s24 = smov 0   ;;  %s2750_s25 = smov 0  }
   0xd   :  { %s2752_s26 = smov 0   ;;  %s2754_s0 = smov 0  }
   0xe   :  { %s2756_s27 = smov 0   ;;  %s2758_s1 = smov 0  }
   0xf   :  { %s2760_s28 = smov 0   ;;  %s2762_s29 = smov 0  }
  0x10   :  { %s2764_s30 = smov 0   ;;  %s2766_s6 = smov 0  }
  0x11   :  { %s2768_s7 = smov 0   ;;  %s2770_s8 = smov 0  }
  0x12   :  { %s2772_s9 = smov 0  }
  0x13 LB: > { %3706 = sst [smem:[#allocation20_spill]] %s2613_s22  ;;  %s2818_s10 = sadd.s32 4294967295, %s2669_s9   ;;  %s2669_s9 = sphi %s2772_s9, %s26_s9   ;;  %s2665_s8 = sphi %s2770_s8, %s3762_s8   ;;  %s2661_s7 = sphi %s2768_s7, %s3761_s7   ;;  %s2657_s6 = sphi %s2766_s6, %s3772_s6   ;;  %s2653_s30 = sphi %s2764_s30, %s3771_s30   ;;  %s2649_s29 = sphi %s2762_s29, %s3770_s29   ;;  %s2645_s28 = sphi %s2760_s28, %s3769_s28   ;;  %s2641_s1 = sphi %s2758_s1, %s3768_s1   ;;  %s2637_s27 = sphi %s2756_s27, %s3759_s27   ;;  %s2633_s0 = sphi %s2754_s0, %s3767_s0   ;;  %s2629_s26 = sphi %s2752_s26, %s3766_s26   ;;  %s2625_s25 = sphi %s2750_s25, %s3765_s25   ;;  %s2621_s24 = sphi %s2748_s24, %s3764_s24   ;;  %s2617_s23 = sphi %s2746_s23, %s3763_s23   ;;  %s2613_s22 = sphi %s2744_s22, %s3758_s22  }
  0x14   : > { %3707 = sst [smem:[#allocation21_spill]] %s2617_s23  ;;  %s1946_s11 = sadd.s32 4294967294, %s2669_s9  }
  0x15   : > { %3708 = sst [smem:[#allocation22_spill]] %s2641_s1  ;;  %s38_s12 = sadd.s32 1, %s2665_s8 }
  0x16   : > { %3709 = sst [smem:[#allocation23_spill]] %s2661_s7  ;;  %p3691_p0 = scmp.eq.s32.totalorder %s2669_s9, 0 }
  0x17   : > { %3710 = sst [smem:[#allocation24_spill]] %s2665_s8  ;;  %p40_p1 = scmp.ge.s32.totalorder %s38_s12, 2 }
  0x18   : > { %p3689_p2 = scmp.eq.s32.totalorder %s2818_s10, 0  ;;  %s72_s13 = sld [smem:[#allocation8]] }
  0x19   : > { %s79_s14 = sadd.s32 1, %s2645_s28  ;;  %s3774_s12 = smov (%p40_p1, %s38_s12), 0 }
  0x1a   : > { %3711 = sst [smem:[#allocation25_spill]] %s3774_s12  ;;  %p86_p3 = scmp.ne.s32.totalorder %s2645_s28, %s2641_s1 }
  0x1b   : > { %p92_p4 = scmp.ne.s32.totalorder %s2641_s1, %s2637_s27  ;;  %s45_s15 = ssub.s32 %s2665_s8, %s3774_s12 }
  0x1c   : > { %s2832_s16 = sld [smem:[#allocation7]]  ;;  %p2836_p5 = por %p86_p3, %p3691_p0 }
  0x1d   : > { %p2842_p6 = por %p92_p4, %p3689_p2  ;;  %s139_s19 = sadd.s32 1, %s2621_s24 }
  0x1e   : > { %p149_p7 = scmp.ne.s32.totalorder %s2621_s24, %s2617_s23  ;;  %p150_p8 = scmp.eq.s32.totalorder %s2818_s10, 1 }
  0x1f   : > { %s3713_s18 = scalar_select %p2842_p6, 1, 0 }
  0x20   : > { %p155_p9 = scmp.ne.s32.totalorder %s2617_s23, %s2613_s22  ;;  %p2852_p10 = scmp.eq.s32.totalorder %s45_s15, 0 }
  0x21   : > { %3714 = sst [smem:[#allocation26_spill]] %s3713_s18  ;;  %p2856_p11 = por %p150_p8, %p149_p7 }
  0x22   : > { %p156_p12 = scmp.eq.s32.totalorder %s1946_s11, 1  ;;  %p3690_p3 = scmp.lt.s32.totalorder %s2669_s9, 2 }
  0x23   : > { %s3716_s21 = scalar_select %p2856_p11, 1, 0 }
  0x24   : > { %s2863_s27 = scalar_select %p2852_p10, %s2645_s28, %s79_s14  }
  0x25   : > { %3717 = sst [smem:[#allocation27_spill]] %s3716_s21  ;;  %p2865_p13 = por %p156_p12, %p155_p9 }
  0x26   : > { %3718 = sst [smem:[#allocation28_spill]] %s2863_s27  ;;  %s200_s22 = sand.u32 1, %s2669_s9  }
  0x27   : > { %s3719_s12 = scalar_select %p2865_p13, 1, 0 }
  0x28   : > { %s2874_s15 = scalar_select %p2852_p10, %s2621_s24, %s139_s19  }
  0x29   : > { %3720 = sst [smem:[#allocation29_spill]] %s3719_s12  ;;  %s202_s5 = sand.u32 1, %s2645_s28  }
  0x2a   : > { %s1953_s21 = sshll.u32 %s202_s5, 3  ;;  %s2002_s11 = sshll.u32 %s72_s13, 2 }
  0x2b   : > { %s2879_s7 = sadd.s32 %s2665_s8, %s2002_s11  ;;  %s204_s14 = scalar_lea.vmem [#allocation12], %s1953_s21 }
  0x2c   : > { %s214_s27 = sshll.u32 %s204_s14, 4  ;;  %s3694_s23 = sshll.u32 %s2879_s7, 6  ;;  %s2882_s27 = int_to_ptr.vmem [resolvable:$true] %s214_s27 }
  0x2d   : > { %s3721_s3 = sld [smem:[#allocation31_spill]]  ;;  %p2895_p4 = pnand %p3690_p3, %p2836_p5 }
  0x2e   : > { %s2901_s13 = scalar_lea.sflag [#allocation13], %s200_s22 }
  0x2f   : > { %p2419_p12 = pneg %p2895_p4 }
  0x33   : > { %s2889_s1 = scalar_lea.hbm %s3721_s3, %s3694_s23  ;;  %s2422_s18 = scalar_lea.hbm %s3721_s3, 256 }
  0x34   : > { %s2417_s19 = scalar_lea.hbm %s2889_s1, 128  ;;  %p2423_p5 = scmp.lt.u32.totalorder %s2889_s1, %s3721_s3 }
  0x35   : > { %p2418_p9 = scmp.ne.s32.totalorder %s2889_s1, %s2417_s19  ;;  %p2424_p3 = scmp.lt.u32.totalorder %s2422_s18, %s2417_s19 }
  0x36   : > { %p2426_p7 = scmp.lt.u32.totalorder %s2417_s19, %s2889_s1 }
  0x37   : > { %p2420_p1 = pnand %p2419_p12, %p2418_p9  ;;  %p2425_p0 = por %p2424_p3, %p2423_p5 }
  0x39   : > { %p2421_p2 = pneg %p2420_p1  ;;  %p2427_p8 = por %p2426_p7, %p2425_p0 }
  0x3b   : > { %p2428_p13 = pnand %p2427_p8, %p2421_p2 }
  0x3d   : > { %2431 = shalt.err (!%p2428_p13)
}
  0x3e   : > { %s2432_s22 = scalar_lea.vmem %s2882_s27, 128  ;;  %s2671_s14 = smov [#allocation12]  }
  0x3f   : > { %p2433_p1 = scmp.ne.s32.totalorder %s2882_s27, %s2432_s22  ;;  %s2437_s12 = sshll.u32 %s2671_s14, 4  ;;  %s2438_s12 = int_to_ptr.vmem [resolvable:$false] %s2437_s12 }
  0x40   : > { %s2439_s17 = scalar_lea.vmem %s2438_s12, 256  ;;  %p2440_p6 = scmp.lt.s32.totalorder %s2882_s27, %s2438_s12 }
  0x41   : > { %p2435_p9 = pnand %p2433_p1, %p2419_p12  ;;  %p2441_p3 = scmp.lt.s32.totalorder %s2439_s17, %s2432_s22 }
  0x43   : > { %p2436_p11 = pneg %p2435_p9  ;;  %p2442_p5 = por %p2441_p3, %p2440_p6 }
  0x45   : > { %p2443_p0 = pnand %p2442_p5, %p2436_p11 }
  0x47   : > { %2446 = shalt.err (!%p2443_p0)
}
  0x48   : > { %s3695_s19 = smov 128   ;;  %s3697_s18 = smov 64  }
  0x49   : > { %s3699_s21 = smov 4   ;;  %p3723_p2 = scmp.lt.s32.totalorder %s2669_s9, 3 }
  0x4a   : > { %2154 = dma.hbm_to_vmem [thread:$0]  (!%p2895_p4), %s2889_s1, 128, %s2882_s27, %s2901_s13, %s3695_s19, %s3697_s18, %s3699_s21  }
  0x4b   : > { %p3724_p6 = scmp.ge.s32.totalorder %s2669_s9, 1  ;;  %s49_s22 = sadd.s32 1, %s2657_s6 }
  0x4c   : > { %p56_p13 = scmp.ne.s32.totalorder %s2657_s6, %s2653_s30  ;;  %p62_p7 = scmp.ne.s32.totalorder %s2653_s30, %s2649_s29 }
  0x4d   : > { %p2936_p11 = pnand %p3724_p6, %p3723_p2  ;;  %s176_s14 = sand.u32 1, %s2657_s6  }
  0x4e   : > { %s2949_s12 = scalar_select %p2852_p10, %s2657_s6, %s49_s22  }
  0x4f   : > { %s3725_s11 = scalar_select %p2936_p11, 1, 0 }
  0x50   : > { %p3726_p8 = scmp.eq.s32.totalorder %s2669_s9, 0  ;;  %p3727_p1 = scmp.eq.s32.totalorder %s2818_s10, 0 }
  0x51   : > { %s1949_s1 = sshll.u32 %s176_s14, 3  ;;  %s2001_s27 = sshll.u32 %s2832_s16, 2 }
  0x52   : > { %p58_p12 = por %p3726_p8, %p56_p13  ;;  %p2955_p9 = por %p3727_p1, %p62_p7 }
  0x53   : > { %s187_s17 = sadd.s32 %s2665_s8, %s2001_s27  ;;  %s180_s23 = scalar_lea.vmem [#allocation9], %s1949_s1 }
  0x54   : > { %s3728_s5 = scalar_select %p2955_p9, 1, 0 }
  0x55   : > { %s190_s19 = sshll.u32 %s180_s23, 4  ;;  %s1952_s18 = sshll.u32 %s187_s17, 6  ;;  %s2961_s19 = int_to_ptr.vmem [resolvable:$true] %s190_s19 }
  0x56   : > { %s3729_s2 = sld [smem:[#allocation30_spill]]  ;;  %p3730_p4 = scmp.lt.s32.totalorder %s2669_s9, 2 }
  0x57   : > { %s2974_s23 = scalar_lea.sflag [#allocation10], %s176_s14 }
  0x58   : > { %p2970_p3 = pnand %p3730_p4, %p58_p12 }
  0x5a   : > { %p2449_p0 = pneg %p2970_p3 }
  0x5c   : > { %s2966_s22 = scalar_lea.hbm %s3729_s2, %s1952_s18  ;;  %s2452_s1 = scalar_lea.hbm %s3729_s2, 256 }
  0x5d   : > { %s2447_s16 = scalar_lea.hbm %s2966_s22, 128  ;;  %p2453_p13 = scmp.lt.u32.totalorder %s2966_s22, %s3729_s2 }
  0x5e   : > { %p2448_p5 = scmp.ne.s32.totalorder %s2966_s22, %s2447_s16  ;;  %p2454_p7 = scmp.lt.u32.totalorder %s2452_s1, %s2447_s16 }
  0x5f   : > { %p2456_p12 = scmp.lt.u32.totalorder %s2447_s16, %s2966_s22 }
  0x60   : > { %p2450_p2 = pnand %p2449_p0, %p2448_p5  ;;  %p2455_p8 = por %p2454_p7, %p2453_p13 }
  0x62   : > { %p2451_p6 = pneg %p2450_p2  ;;  %p2457_p1 = por %p2456_p12, %p2455_p8 }
  0x64   : > { %p2458_p4 = pnand %p2457_p1, %p2451_p6 }
  0x66   : > { %2461 = shalt.err (!%p2458_p4)
}
  0x67   : > { %s2462_s14 = scalar_lea.vmem %s2961_s19, 128  ;;  %s2675_s29 = smov [#allocation9]  }
  0x68   : > { %p2463_p5 = scmp.ne.s32.totalorder %s2961_s19, %s2462_s14  ;;  %s2467_s18 = sshll.u32 %s2675_s29, 4  ;;  %s2468_s18 = int_to_ptr.vmem [resolvable:$false] %s2467_s18 }
  0x69   : > { %s2469_s21 = scalar_lea.vmem %s2468_s18, 256  ;;  %p2470_p11 = scmp.lt.s32.totalorder %s2961_s19, %s2468_s18 }
  0x6a   : > { %p2465_p2 = pnand %p2463_p5, %p2449_p0  ;;  %p2471_p13 = scmp.lt.s32.totalorder %s2469_s21, %s2462_s14 }
  0x6c   : > { %p2466_p9 = pneg %p2465_p2  ;;  %p2472_p7 = por %p2471_p13, %p2470_p11 }
  0x6e   : > { %p2473_p8 = pnand %p2472_p7, %p2466_p9 }
  0x70   : > { %2476 = shalt.err (!%p2473_p8)
}
  0x71   : > { %s3732_s16 = smov 4   ;;  %s3733_s1 = smov 64  }
  0x72   : > { %s3734_s27 = smov 128   ;;  %s109_s3 = sadd.s32 1, %s2633_s0 }
  0x73   : > { %2151 = dma.hbm_to_vmem [thread:$0]  (!%p2970_p3), %s2966_s22, 128, %s2961_s19, %s2974_s23, %s3734_s27, %s3733_s1, %s3732_s16  }
  0x74   : > { %s3009_s17 = scalar_select %p2852_p10, %s2633_s0, %s109_s3  }
  0x75   : > { %p116_p11 = scmp.ne.s32.totalorder %s2633_s0, %s2629_s26  ;;  %p122_p9 = scmp.ne.s32.totalorder %s2629_s26, %s2625_s25 }
  0x76   : > { %s226_s14 = sand.u32 1, %s2633_s0   ;;  %p3735_p0 = scmp.eq.s32.totalorder %s2669_s9, 0 }
  0x77   : > { %p3736_p12 = scmp.eq.s32.totalorder %s2818_s10, 0  ;;  %s1957_s18 = sshll.u32 %s226_s14, 3 }
  0x78   : > { %p118_p6 = por %p116_p11, %p3735_p0  ;;  %s3738_s21 = sshll.u32 %s2879_s7, 6 }
  0x79   : > { %p3020_p1 = por %p122_p9, %p3736_p12  ;;  %s3029_s19 = scalar_lea.hbm %s3676_s4, %s3738_s21 }
  0x7a   : > { %p3739_p3 = scmp.lt.s32.totalorder %s2669_s9, 2  ;;  %s228_s20 = scalar_lea.vmem [#allocation14], %s1957_s18 }
  0x7b   : > { %s238_s22 = sshll.u32 %s228_s20, 4  ;;  %s2477_s7 = scalar_lea.hbm %s3029_s19, 128  ;;  %s3037_s22 = int_to_ptr.vmem [resolvable:$true] %s238_s22 }
  0x7c   : > { %p3033_p10 = pnand %p3739_p3, %p118_p6  ;;  %p2478_p4 = scmp.ne.s32.totalorder %s3029_s19, %s2477_s7 }
  0x7d   : > { %s2482_s23 = scalar_lea.hbm %s3676_s4, 256  ;;  %p2483_p7 = scmp.lt.u32.totalorder %s3029_s19, %s3676_s4 }
  0x7e   : > { %p2479_p5 = pneg %p3033_p10  ;;  %p2484_p8 = scmp.lt.u32.totalorder %s2482_s23, %s2477_s7 }
  0x7f   : > { %p2486_p9 = scmp.lt.u32.totalorder %s2477_s7, %s3029_s19 }
  0x80   : > { %p2480_p2 = pnand %p2479_p5, %p2478_p4  ;;  %p2485_p11 = por %p2484_p8, %p2483_p7 }
  0x82   : > { %p2481_p13 = pneg %p2480_p2  ;;  %p2487_p0 = por %p2486_p9, %p2485_p11 }
  0x84   : > { %p2488_p6 = pnand %p2487_p0, %p2481_p13 }
  0x86   : > { %2491 = shalt.err (!%p2488_p6)
}
  0x87   : > { %s2492_s18 = scalar_lea.vmem %s3037_s22, 128  ;;  %s2676_s21 = smov [#allocation14]  }
  0x88   : > { %p2493_p12 = scmp.ne.s32.totalorder %s3037_s22, %s2492_s18  ;;  %s2497_s20 = sshll.u32 %s2676_s21, 4  ;;  %s2498_s20 = int_to_ptr.vmem [resolvable:$false] %s2497_s20 }
  0x89   : > { %s2499_s2 = scalar_lea.vmem %s2498_s20, 256  ;;  %p2500_p2 = scmp.lt.s32.totalorder %s3037_s22, %s2498_s20 }
  0x8a   : > { %p2495_p3 = pnand %p2493_p12, %p2479_p5  ;;  %p2501_p7 = scmp.lt.s32.totalorder %s2499_s2, %s2492_s18 }
  0x8c   : > { %p2496_p4 = pneg %p2495_p3  ;;  %p2502_p8 = por %p2501_p7, %p2500_p2 }
  0x8e   : > { %p2503_p11 = pnand %p2502_p8, %p2496_p4 }
  0x90   : > { %2506 = shalt.err (!%p2503_p11)
}
  0x91   : > { %2157 = dma.hbm_to_vmem [thread:$0]  (!%p3033_p10), %s3029_s19, 128, %s3037_s22, %s2901_s13, %s3734_s27, %s3733_s1, %s3732_s16  }
  0x92   : > { %p3741_p5 = scmp.ne.s32.totalorder %s3725_s11, 0 }
  0x93   : > { %s252_s7 = sand.u32 (!%p3741_p5), 1, %s2653_s30   ;;  %p3742_p13 = scmp.ne.s32.totalorder (!%p3741_p5), %s3728_s5, 0 }
  0x94   : > { %250 = sbr.rel (%p3741_p5) target bundleno = 3273 (0xcc9), region = 32  ;;  %s1962_s8 = sshll.u32 (!%p3741_p5), %s252_s7, 3 }
  0x95   : > { %s253_s23 = scalar_lea.sflag (!%p3741_p5), [#allocation10], %s252_s7  ;;  %s256_s3 = scalar_lea.vmem (!%p3741_p5), [#allocation9], %s1962_s8 }
  0x9b   : > { %2596 = dma.done.wait (%p3742_p13), %s253_s23, 128  }
  0x9c   : > { %2598 = vsyncadd (%p3742_p13), %s253_s23, 4294967168  ;;  %s3743_s25 = sld [smem:[#allocation22_spill]]  ;;  %s3744_s14 = sld [smem:[#allocation26_spill]] }
  0x9d   : > { %s261_s18 = sand.u32 1, %s2818_s10  }
  0x9e   : > { %s262_s11 = scalar_lea.sflag [#allocation13], %s261_s18 }
  0xa2   : > { %s263_s21 = sand.u32 1, %s3743_s25   ;;  %p3745_p10 = scmp.ne.s32.totalorder %s3744_s14, 0 }
  0xa3   : > { %s3077_s13 = sshll.u32 %s263_s21, 3 }
  0xa4   : > { %s265_s16 = scalar_lea.vmem [#allocation12], %s3077_s13 }
  0xa5   : > { %2600 = dma.done.wait (%p3745_p10), %s262_s11, 128  }
  0xa6   : > { %2602 = vsyncadd (%p3745_p10), %s262_s11, 4294967168  ;;  %s272_s1 = sand.u32 1, %s2629_s26  }
  0xa7   : > { %s3085_s5 = sshll.u32 %s272_s1, 3 }
  0xa8   : > { %s274_s27 = scalar_lea.vmem [#allocation14], %s3085_s5 }
  0xa9   : > { %2604 = dma.done.wait (%p3020_p1), %s262_s11, 128  }
  0xaa   : > { %2606 = vsyncadd (%p3020_p1), %s262_s11, 4294967168  ;;  %s3746_s10 = sld [smem:[#allocation21_spill]]  ;;  %s3093_s22 = sld [smem:[#allocation7]] }
  0xab   : > { %s3095_s20 = sld [smem:[#allocation8]] }
  0xb0   : > { %s304_s19 = sand.u32 1, %s3746_s10  }
  0xb1   : > { %s3099_s2 = sshll.u32 %s304_s19, 3  ;;  %p1966_p9 = scmp.ne.s32.totalorder %s3095_s20, 0 }
  0xb2   : > { %s306_s7 = scalar_lea.vmem [#allocation15], %s3099_s2  ;;  %v330_v0 = vld [vmem:[%s256_s3] sm:$0xf] (!%p1966_p9)  ;;  %v331_v1 = vld [vmem:[%s256_s3 + $0x4] sm:$0xf] (!%p1966_p9)  ;;  %vm323_vm0 = vcmask (!%p1966_p9), 31744  }
  0xb3   : > { %322 = sbr.rel (%p1966_p9) target bundleno = 303 (0x12f), region = 48  ;;  %v332_v2 = vmul.bf16 (!%p1966_p9), 1043676725, %v330_v0  ;;  %v333_v3 = vmul.bf16 (!%p1966_p9), 1043676725, %v331_v1  ;;  %v2678_v6 = vmov (!%p1966_p9), 0.0  }
  0xb4   : > { %v2677_v5 = vmov (!%p1966_p9), -1e+30   ;;  %326 = vst.msk [vmem:[#allocation4] sm:$0xff] (!%p1966_p9), %vm323_vm0, %v2678_v6  ;;  %327 = vst.msk [vmem:[#allocation4 + $0x8] sm:$0xff] (!%p1966_p9), %vm323_vm0, %v2678_v6  ;;  %vm340_vm1 = vcmask (!%p1966_p9), 261120   ;;  %s2679_s29 = smov (!%p1966_p9), 96  }
  0xb5   : > { %v1967_v4 = vcombine.low (!%p1966_p9), %v332_v2, %v333_v3  ;;  %324 = vst.msk [vmem:[#allocation3] sm:$0xff] (!%p1966_p9), %vm323_vm0, %v2677_v5  ;;  %325 = vst.msk [vmem:[#allocation3 + $0x8] sm:$0xff] (!%p1966_p9), %vm323_vm0, %v2677_v5  ;;  %s2680_s8 = smov (!%p1966_p9), 32   ;;  %s2681_s23 = smov (!%p1966_p9), 64  }
  0xb6   : > { %328 = vst [vmem:[#allocation5] sm:$0xff] (!%p1966_p9), %v2678_v6  ;;  %329 = vst [vmem:[#allocation5 + $0x8] sm:$0xff] (!%p1966_p9), %v2678_v6 }
  0xb7   : > { %342 = vrot.lane.b32.xlu0 (!%p1966_p9), %v1967_v4, %s2679_s29  ;;  %352 = vrot.lane.b32.xlu1 (!%p1966_p9), %v1967_v4, %s2680_s8  ;;  %341 = vst.msk [vmem:[#allocation2] sm:$0xff] (!%p1966_p9), %vm340_vm1, %v1967_v4 }
  0xbb   : > { %347 = vrot.lane.b32.xlu0 %v1967_v4, %s2681_s23 }
 0x129   : > { %v343_v7 = vpop.permute.xlu0 %342  ;;  %v353_v8 = vpop.permute.xlu1 %352 }
 0x12a   : > { %346 = vst.msk [vmem:[#allocation2 + $0x8] sm:$0xff] %vm340_vm1, %v343_v7  ;;  %356 = vst.msk [vmem:[#allocation2 + $0x18] sm:$0xff] %vm340_vm1, %v353_v8 }
 0x12d   : > { %v348_v9 = vpop.permute.xlu0 %347 }
 0x12e   : > { %351 = vst.msk [vmem:[#allocation2 + $0x10] sm:$0xff] %vm340_vm1, %v348_v9 }
 0x12f PF: > { %p1968_p1 = scmp.ge.s32.totalorder %s3095_s20, %s3093_s22 }
 0x130   : > { %v2328_v10 = vld [vmem:[%s265_s16] sm:$0xff] (!%p1968_p1)   ;;  %v2682_v11 = vmov (!%p1968_p1), 0.0   ;;  %vm376_vm2 = vcmask (!%p1968_p1), 261120   ;;  %vm2683_vm3 = vmmov (!%p1968_p1), 0   ;;  %vm424_vm4 = vcmask (!%p1968_p1), 130048   ;;  %s2685_s3 = smov (!%p1968_p1), 96  }
 0x131   : > { %361 = sbr.rel (%p1968_p1) target bundleno = 1690 (0x69a), region = 52  ;;  %2044 = vmatprep.subr.bf16.mxu0 (!%p1968_p1), %v2682_v11  ;;  %2050 = vmatprep.subr.bf16.mxu1 (!%p1968_p1), %v2682_v11  ;;  %v381_v12 = vsel (!%p1968_p1), %vm376_vm2, %v2328_v10, 0  ;;  %v2684_v20 = vmov (!%p1968_p1), 0   ;;  %v3122_v21 = vld [vmem:[#allocation3] sm:$0xff] (!%p1968_p1)  ;;  %v3127_v24 = vld [vmem:[#allocation3 + $0x8] sm:$0xff] (!%p1968_p1)  ;;  %s2686_s25 = smov (!%p1968_p1), 64  }
 0x132   : > { %2046 = vmatprep.mubr.msk.bf16.mxu0 (!%p1968_p1), %vm2683_vm3, %v2682_v11  ;;  %2052 = vmatprep.mubr.msk.bf16.mxu1 (!%p1968_p1), %vm2683_vm3, %v2682_v11  ;;  %v3137_v27 = vld [vmem:[%s274_s27] sm:$0xff] (!%p1968_p1)   ;;  %s2687_s14 = smov (!%p1968_p1), 32   ;;  %v513_v40 = vld [vmem:[#allocation2 + $0x8] sm:$0xff] (!%p1968_p1)  ;;  %v2688_v1 = vmov (!%p1968_p1), 1   ;;  %v2689_v9 = vmov (!%p1968_p1), 2   ;;  %vm917_vm5 = vcmask (!%p1968_p1), 7168  }
 0x133   : > { %2045 = vmatpush3.bf16.xpose.msra.mxu0 (!%p1968_p1), %v381_v12  ;;  %v370_v13 = vld [vmem:[#allocation2] sm:$0xff] (!%p1968_p1)  ;;  %2317 = vset.pattern.permute.xlu1 (!%p1968_p1), %v2684_v20  ;;  %v783_v45 = vld [vmem:[#allocation2 + $0x18] sm:$0xff] (!%p1968_p1)  ;;  %vm920_vm6 = vcmask (!%p1968_p1), 15360   ;;  %vm923_vm7 = vcmask (!%p1968_p1), 23552   ;;  %vm926_vm8 = vcmask (!%p1968_p1), 31744   ;;  %vm989_vm9 = vcmask (!%p1968_p1), 523264  }
 0x134   : > { %2062 = vmatprep.subr.bf16.mxu0 (!%p1968_p1), %v2682_v11  ;;  %2051 = vmatpush3.bf16.msra.mxu1 (!%p1968_p1), %v3137_v27  ;;  %vm992_vm10 = vcmask (!%p1968_p1), 785408  }
 0x135   : > { %2056 = vmatprep.subr.bf16.mxu1 (!%p1968_p1), %v2682_v11  ;;  %v648_v43 = vld [vmem:[#allocation2 + $0x10] sm:$0xff] (!%p1968_p1)  ;;  %2319 = vset.pattern.permute.xlu0 (!%p1968_p1), %v2688_v1 }
 0x13a   : > { %2047 = vmatmul.mubr.msk.bf16.vlgmr.msra.gmra.mrb[0].mxu0 %vm376_vm2, %v370_v13 }
 0x13b   : > { %2064 = vmatprep.mubr.msk.bf16.mxu0 %vm2683_vm3, %v2682_v11 }
 0x20d   : > { %v417_v14 = vpop.f32.mrb[0].mxu0 }
 0x20e   : > { %v2048_v15 = vpop.f32.mrb[1].mxu0  ;;  %v425_v16 = vsel %vm424_vm4, %v417_v14, -inf }
 0x20f   : > { %426 = vmax.xlane.f32.xlu0 %v425_v16  ;;  %v420_v17 = vpop.f32.mrb[2].mxu0 }
 0x210   : > { %v2049_v18 = vpop.f32.mrb[3].mxu0  ;;  %v428_v19 = vsel %vm424_vm4, %v420_v17, -inf }
 0x213   : > { %429 = vmax.xlane.f32.xlu0 %v428_v19 }
 0x229   : > { %514 = vrot.lane.b32.xlu0 %v2328_v10, %s2685_s3 }
 0x29c   : > { %v427_v22 = vpop.xlane.xlu0 %426 }
 0x29d   : > { %v3125_v23 = vmax.f32 %v3122_v21, %v427_v22 }
 0x29f   : > { %441 = vperm.xlu1 %2317, %v3125_v23  }
 0x2a0   : > { %v430_v25 = vpop.xlane.xlu0 %429 }
 0x2a1   : > { %v3131_v26 = vmax.f32 %v3127_v24, %v430_v25 }
 0x2a3   : > { %446 = vperm.xlu1 %2317, %v3131_v26  }
 0x2a4   : > { %v515_v34 = vpop.permute.xlu0 %514 }
 0x2a5   : > { %v520_v37 = vsel %vm376_vm2, %v515_v34, 0 }
 0x2a7   : > { %649 = vrot.lane.b32.xlu1 %v2328_v10, %s2686_s25 }
 0x2a8   : > { %2318 = vset.pattern.permute.xlu1 %v2688_v1 }
 0x2ab   : > { %784 = vrot.lane.b32.xlu1 %v2328_v10, %s2687_s14 }
 0x31e   : > { %v442_v28 = vpop.permute.xlu1 %441 }
 0x31f   : > { %v449_v29 = vsub.f32 %v417_v14, %v442_v28 }
 0x321   : > { %v451_v30 = vmul.f32 1.442695, %v449_v29  ;;  %v2690_v29 = vmov 3  }
 0x322   : > { %v447_v31 = vpop.permute.xlu1 %446 }
 0x323   : > { %v450_v32 = vsub.f32 %v420_v17, %v447_v31  ;;  %2330 = vpow2.f32 %v451_v30 }
 0x325   : > { %v453_v33 = vmul.f32 1.442695, %v450_v32 }
 0x326   : > { %v650_v39 = vpop.permute.xlu1 %649 }
 0x327   : > { %2332 = vpow2.f32 %v453_v33  ;;  %v655_v41 = vsel %vm376_vm2, %v650_v39, 0  ;;  %v434_v33 = vsub.f32 %v3127_v24, %v3131_v26 }
 0x329   : > { %v437_v34 = vmul.f32 1.442695, %v434_v33 }
 0x32a   : > { %v785_v42 = vpop.permute.xlu1 %784 }
 0x32b   : > { %v790_v44 = vsel %vm376_vm2, %v785_v42, 0  ;;  %2334 = vpow2.f32 %v437_v34 }
 0x32d   : > { %v3142_v35 = vpop.eup %2330 }
 0x32e   : > { %v455_v32 = vsel %vm424_vm4, %v3142_v35, 0.0 }
 0x331   : > { %v3144_v36 = vpop.eup %2332 }
 0x332   : > { %v461_v38 = vpack.c.bf16 %v3144_v36, %v3142_v35  ;;  %v458_v35 = vsel %vm424_vm4, %v3144_v36, 0.0 }
 0x334   : > { %2053 = vmatmul.mubr.msk.bf16.vlgmr.msra.gmra.mrb[0].mxu1 %vm424_vm4, %v461_v38 }
 0x335   : > { %2057 = vmatpush3.bf16.xpose.msra.mxu1 %v520_v37  ;;  %2058 = vmatprep.mubr.msk.bf16.mxu1 %vm2683_vm3, %v2682_v11  ;;  %v3222_v37 = vpop.eup %2334 }
 0x336   : > { %2068 = vmatprep.subr.bf16.mxu1 %v2682_v11 }
 0x33c   : > { %2059 = vmatmul.mubr.msk.bf16.vlgmr.msra.gmra.mrb[4].mxu1 %vm376_vm2, %v513_v40 }
 0x33d   : > { %2069 = vmatpush3.bf16.xpose.msra.mxu1 %v655_v41  ;;  %2070 = vmatprep.mubr.msk.bf16.mxu1 %vm2683_vm3, %v2682_v11 }
 0x33e   : > { %2080 = vmatprep.subr.bf16.mxu1 %v2682_v11 }
 0x344   : > { %2071 = vmatmul.mubr.msk.bf16.vlgmr.msra.gmra.mrb[8].mxu1 %vm376_vm2, %v648_v43 }
 0x345   : > { %2081 = vmatpush3.bf16.xpose.msra.mxu1 %v790_v44  ;;  %2082 = vmatprep.mubr.msk.bf16.mxu1 %vm2683_vm3, %v2682_v11 }
 0x34c   : > { %2083 = vmatmul.mubr.msk.bf16.vlgmr.msra.gmra.mrb[12].mxu1 %vm376_vm2, %v783_v45 }
 0x407   : > { %v3163_v46 = vpop.f32.mrb[0].mxu1 }
 0x408   : > { %v2054_v47 = vpop.f32.mrb[1].mxu1 }
 0x409   : > { %v3165_v48 = vpop.f32.mrb[2].mxu1 }
 0x40a   : > { %v2055_v49 = vpop.f32.mrb[3].mxu1 }
 0x40f   : > { %v3167_v50 = vpop.f32.mrb[4].mxu1 }
 0x410   : > { %v2060_v51 = vpop.f32.mrb[5].mxu1  ;;  %v563_v52 = vsel %vm424_vm4, %v3167_v50, -inf }
 0x411   : > { %564 = vmax.xlane.f32.xlu1 %v563_v52  ;;  %v3171_v53 = vpop.f32.mrb[6].mxu1 }
 0x412   : > { %v2061_v54 = vpop.f32.mrb[7].mxu1  ;;  %v566_v55 = vsel %vm424_vm4, %v3171_v53, -inf }
 0x413   : > { %567 = vmax.xlane.f32.xlu0 %v566_v55 }
 0x417   : > { %v3175_v56 = vpop.f32.mrb[8].mxu1 }
 0x418   : > { %v2072_v57 = vpop.f32.mrb[9].mxu1  ;;  %v698_v58 = vsel %vm424_vm4, %v3175_v56, -inf }
 0x419   : > { %699 = vmax.xlane.f32.xlu1 %v698_v58  ;;  %v3179_v59 = vpop.f32.mrb[10].mxu1 }
 0x41a   : > { %v2073_v60 = vpop.f32.mrb[11].mxu1  ;;  %v701_v61 = vsel %vm424_vm4, %v3179_v59, -inf }
 0x41d   : > { %702 = vmax.xlane.f32.xlu1 %v701_v61 }
 0x41f   : > { %v3183_v62 = vpop.f32.mrb[12].mxu1 }
 0x420   : > { %v2084_v63 = vpop.f32.mrb[13].mxu1  ;;  %v833_v0 = vsel %vm424_vm4, %v3183_v62, -inf }
 0x421   : > { %834 = vmax.xlane.f32.xlu1 %v833_v0  ;;  %v3189_v2 = vpop.f32.mrb[14].mxu1 }
 0x422   : > { %v2085_v3 = vpop.f32.mrb[15].mxu1  ;;  %v836_v4 = vsel %vm424_vm4, %v3189_v2, -inf }
 0x423   : > { %837 = vmax.xlane.f32.xlu0 %v836_v4 }
 0x49e   : > { %v565_v5 = vpop.xlane.xlu1 %564 }
 0x49f   : > { %v569_v6 = vmax.f32 %v3122_v21, %v565_v5 }
 0x4a0   : > { %v568_v7 = vpop.xlane.xlu0 %567 }
 0x4a1   : > { %v570_v8 = vmax.f32 %v3127_v24, %v568_v7  ;;  %579 = vperm.xlu1 %2318, %v569_v6   ;;  %v918_v16 = vsel %vm917_vm5, %v3125_v23, %v569_v6 }
 0x4a3   : > { %584 = vperm.xlu0 %2319, %v570_v8   ;;  %v919_v22 = vsel %vm917_vm5, %v3131_v26, %v570_v8  ;;  %v572_v26 = vsub.f32 %v3127_v24, %v570_v8 }
 0x4a5   : > { %2320 = vset.pattern.permute.xlu1 %v2689_v9  ;;  %v575_v40 = vmul.f32 1.442695, %v572_v26 }
 0x4a6   : > { %v700_v10 = vpop.xlane.xlu1 %699 }
 0x4a7   : > { %v704_v12 = vmax.f32 %v3122_v21, %v700_v10  ;;  %2323 = vset.pattern.permute.xlu0 %v2684_v20 }
 0x4a9   : > { %714 = vperm.xlu1 %2320, %v704_v12   ;;  %v921_v18 = vsel %vm920_vm6, %v918_v16, %v704_v12  ;;  %v706_v41 = vsub.f32 %v3122_v21, %v704_v12 }
 0x4aa   : > { %v703_v13 = vpop.xlane.xlu1 %702 }
 0x4ab   : > { %v705_v14 = vmax.f32 %v3127_v24, %v703_v13  ;;  %v708_v43 = vmul.f32 1.442695, %v706_v41 }
 0x4ad   : > { %719 = vperm.xlu1 %2320, %v705_v14   ;;  %v922_v30 = vsel %vm920_vm6, %v919_v22, %v705_v14 }
 0x4ae   : > { %v835_v15 = vpop.xlane.xlu1 %834 }
 0x4af   : > { %v839_v17 = vmax.f32 %v3122_v21, %v835_v15 }
 0x4b0   : > { %v838_v19 = vpop.xlane.xlu0 %837 }
 0x4b1   : > { %v924_v25 = vsel %vm923_vm7, %v921_v18, %v839_v17  ;;  %v840_v28 = vmax.f32 %v3127_v24, %v838_v19  ;;  %2321 = vset.pattern.permute.xlu1 %v2690_v29  ;;  %v841_v45 = vsub.f32 %v3122_v21, %v839_v17 }
 0x4b2   : > { %927 = vst.msk [vmem:[#allocation3] sm:$0xff] %vm926_vm8, %v924_v25  ;;  %849 = vperm.xlu1 %2321, %v839_v17  }
 0x4b3   : > { %v925_v31 = vsel %vm923_vm7, %v922_v30, %v840_v28  ;;  %v843_v49 = vmul.f32 1.442695, %v841_v45  ;;  %v842_v51 = vsub.f32 %v3127_v24, %v840_v28 }
 0x4b4   : > { %928 = vst.msk [vmem:[#allocation3 + $0x8] sm:$0xff] %vm926_vm8, %v925_v31 }
 0x4b5   : > { %v845_v52 = vmul.f32 1.442695, %v842_v51 }
 0x4b6   : > { %854 = vperm.xlu1 %2321, %v840_v28  }
 0x4ba   : > { %600 = vrot.lane.b32.xlu1 %v3137_v27, %s2685_s3 }
 0x4bb   : > { %2322 = vset.pattern.permute.xlu1 %v2684_v20  ;;  %v433_v20 = vsub.f32 %v3122_v21, %v3125_v23  ;;  %v707_v23 = vsub.f32 %v3127_v24, %v705_v14 }
 0x4bd   : > { %v435_v38 = vmul.f32 1.442695, %v433_v20  ;;  %v710_v36 = vmul.f32 1.442695, %v707_v23 }
 0x4be   : > { %735 = vrot.lane.b32.xlu1 %v3137_v27, %s2686_s25 }
 0x4bf   : > { %2336 = vpow2.f32 %v435_v38 }
 0x4c2   : > { %456 = vadd.xlane.f32.xlu0 %v455_v32  ;;  %870 = vrot.lane.b32.xlu1 %v3137_v27, %s2687_s14  ;;  %v571_v27 = vsub.f32 %v3122_v21, %v569_v6 }
 0x4c4   : > { %v573_v39 = vmul.f32 1.442695, %v571_v27 }
 0x4c6   : > { %2338 = vpow2.f32 %v573_v39 }
 0x4c7   : > { %2340 = vpow2.f32 %v575_v40 }
 0x4c8   : > { %2342 = vpow2.f32 %v708_v43 }
 0x4c9   : > { %v3232_v42 = vpop.eup %2336  ;;  %2344 = vpow2.f32 %v710_v36 }
 0x4ca   : > { %2346 = vpow2.f32 %v843_v49 }
 0x4cb   : > { %2348 = vpow2.f32 %v845_v52 }
 0x4d0   : > { %v3236_v44 = vpop.eup %2338 }
 0x4d1   : > { %v3241_v47 = vpop.eup %2340  ;;  %v929_v52 = vsel %vm917_vm5, %v3232_v42, %v3236_v44 }
 0x4d2   : > { %v3245_v54 = vpop.eup %2342 }
 0x4d3   : > { %v3249_v21 = vpop.eup %2344 }
 0x4d4   : > { %v3252_v55 = vpop.eup %2346 }
 0x4d5   : > { %v3255_v24 = vpop.eup %2348 }
 0x4d8   : > { %954 = vperm.xlu0 %2323, %v3222_v37  }
 0x4dc   : > { %2327 = vset.pattern.permute.xlu0 %v2690_v29 }
 0x4e6   : > { %459 = vadd.xlane.f32.xlu1 %v458_v35 }
 0x4f7   : > { %949 = vperm.xlu1 %2322, %v3232_v42  }
 0x4fb   : > { %2324 = vset.pattern.permute.xlu1 %v2688_v1 }
 0x4fc   : > { %959 = vperm.xlu1 %2324, %v3236_v44  }
 0x500   : > { %964 = vperm.xlu1 %2324, %v3241_v47  }
 0x504   : > { %2325 = vset.pattern.permute.xlu1 %v2689_v9 }
 0x505   : > { %969 = vperm.xlu1 %2325, %v3245_v54  }
 0x509   : > { %974 = vperm.xlu1 %2325, %v3249_v21  }
 0x50d   : > { %2326 = vset.pattern.permute.xlu1 %v2690_v29 }
 0x50e   : > { %979 = vperm.xlu1 %2326, %v3252_v55  }
 0x512   : > { %984 = vperm.xlu1 %2326, %v3255_v24  }
 0x520   : > { %v580_v57 = vpop.permute.xlu1 %579 }
 0x521   : > { %v587_v58 = vsub.f32 %v3167_v50, %v580_v57 }
 0x522   : > { %v585_v60 = vpop.permute.xlu0 %584 }
 0x523   : > { %v589_v61 = vmul.f32 1.442695, %v587_v58  ;;  %v588_v63 = vsub.f32 %v3171_v53, %v585_v60  ;;  %v931_v60 = vsel %vm920_vm6, %v929_v52, %v3245_v54 }
 0x525   : > { %2350 = vpow2.f32 %v589_v61  ;;  %v591_v0 = vmul.f32 1.442695, %v588_v63  ;;  %v368_v61 = vld [vmem:[#allocation4] sm:$0xff]  ;;  %v933_v63 = vsel %vm923_vm7, %v931_v60, %v3252_v55 }
 0x527   : > { %2352 = vpow2.f32 %v591_v0 }
 0x528   : > { %v715_v1 = vpop.permute.xlu1 %714 }
 0x529   : > { %v722_v3 = vsub.f32 %v3175_v56, %v715_v1  ;;  %v930_v1 = vsel %vm917_vm5, %v3222_v37, %v3241_v47 }
 0x52a   : > { %v932_v44 = vsel %vm920_vm6, %v930_v1, %v3249_v21 }
 0x52b   : > { %v724_v4 = vmul.f32 1.442695, %v722_v3  ;;  %v934_v55 = vsel %vm923_vm7, %v932_v44, %v3255_v24 }
 0x52c   : > { %v720_v5 = vpop.permute.xlu1 %719 }
 0x52d   : > { %2354 = vpow2.f32 %v724_v4  ;;  %v723_v6 = vsub.f32 %v3179_v59, %v720_v5  ;;  %v935_v5 = vmul.f32 %v933_v63, %v368_v61 }
 0x52f   : > { %v2351_v7 = vpop.eup %2350  ;;  %v726_v8 = vmul.f32 1.442695, %v723_v6  ;;  %v369_v6 = vld [vmem:[#allocation4 + $0x8] sm:$0xff] }
 0x530   : > { %v593_v9 = vsel %vm424_vm4, %v2351_v7, 0.0  ;;  %v936_v37 = vmul.f32 %v934_v55, %v369_v6 }
 0x531   : > { %v2353_v50 = vpop.eup %2352  ;;  %2356 = vpow2.f32 %v726_v8  ;;  %v850_v10 = vpop.permute.xlu1 %849  ;;  %594 = vadd.xlane.f32.xlu0 %v593_v9 }
 0x532   : > { %v857_v53 = vsub.f32 %v3183_v62, %v850_v10  ;;  %v599_v12 = vpack.c.bf16 %v2353_v50, %v2351_v7  ;;  %v596_v14 = vsel %vm424_vm4, %v2353_v50, 0.0 }
 0x534   : > { %v859_v13 = vmul.f32 1.442695, %v857_v53 }
 0x535   : > { %v855_v56 = vpop.permute.xlu1 %854  ;;  %597 = vadd.xlane.f32.xlu0 %v596_v14 }
 0x536   : > { %2358 = vpow2.f32 %v859_v13  ;;  %v858_v15 = vsub.f32 %v3189_v2, %v855_v56 }
 0x537   : > { %v2355_v59 = vpop.eup %2354 }
 0x538   : > { %v861_v16 = vmul.f32 1.442695, %v858_v15  ;;  %v728_v17 = vsel %vm424_vm4, %v2355_v59, 0.0 }
 0x539   : > { %v601_v18 = vpop.permute.xlu1 %600  ;;  %729 = vadd.xlane.f32.xlu1 %v728_v17 }
 0x53a   : > { %2360 = vpow2.f32 %v861_v16  ;;  %2063 = vmatpush3.bf16.msra.mxu0 %v601_v18 }
 0x53b   : > { %v2357_v19 = vpop.eup %2356  ;;  %2074 = vmatprep.subr.bf16.mxu0 %v2682_v11 }
 0x53c   : > { %v731_v62 = vsel %vm424_vm4, %v2357_v19, 0.0  ;;  %v734_v22 = vpack.c.bf16 %v2357_v19, %v2355_v59 }
 0x53d   : > { %2065 = vmatmul.mubr.msk.bf16.vlgmr.msra.gmra.mrb[4].mxu0 %vm424_vm4, %v599_v12  ;;  %732 = vadd.xlane.f32.xlu0 %v731_v62  ;;  %v736_v25 = vpop.permute.xlu1 %735 }
 0x53e   : > { %2075 = vmatpush3.bf16.msra.mxu0 %v736_v25  ;;  %2076 = vmatprep.mubr.msk.bf16.mxu0 %vm2683_vm3, %v2682_v11  ;;  %v995_v25 = vld [vmem:[#allocation5] sm:$0xff] }
 0x53f   : > { %2086 = vmatprep.subr.bf16.mxu0 %v2682_v11 }
 0x540   : > { %v2359_v2 = vpop.eup %2358 }
 0x541   : > { %v863_v28 = vsel %vm424_vm4, %v2359_v2, 0.0  ;;  %v871_v29 = vpop.permute.xlu1 %870 }
 0x542   : > { %864 = vadd.xlane.f32.xlu1 %v863_v28  ;;  %v996_v28 = vld [vmem:[#allocation5 + $0x8] sm:$0xff] }
 0x544   : > { %v2361_v30 = vpop.eup %2360 }
 0x545   : > { %2077 = vmatmul.mubr.msk.bf16.vlgmr.msra.gmra.mrb[8].mxu0 %vm424_vm4, %v734_v22  ;;  %v866_v31 = vsel %vm424_vm4, %v2361_v30, 0.0  ;;  %v869_v32 = vpack.c.bf16 %v2361_v30, %v2359_v2 }
 0x546   : > { %867 = vadd.xlane.f32.xlu0 %v866_v31  ;;  %2087 = vmatpush3.bf16.msra.mxu0 %v871_v29 }
 0x547   : > { %2088 = vmatprep.mubr.msk.bf16.mxu0 %vm2683_vm3, %v2682_v11 }
 0x54d   : > { %2089 = vmatmul.mubr.msk.bf16.vlgmr.msra.gmra.mrb[12].mxu0 %vm424_vm4, %v869_v32 }
 0x54f   : > { %v457_v20 = vpop.xlane.xlu0 %456 }
 0x557   : > { %v955_v27 = vpop.permute.xlu0 %954 }
 0x573   : > { %v460_v33 = vpop.xlane.xlu1 %459 }
 0x577   : > { %v950_v34 = vpop.permute.xlu1 %949 }
 0x57b   : > { %v960_v35 = vpop.permute.xlu1 %959 }
 0x57c   : > { %v987_v38 = vsel %vm376_vm2, %v950_v34, %v960_v35 }
 0x57f   : > { %v965_v39 = vpop.permute.xlu1 %964 }
 0x580   : > { %v988_v26 = vsel %vm376_vm2, %v955_v27, %v965_v39 }
 0x584   : > { %v970_v40 = vpop.permute.xlu1 %969 }
 0x585   : > { %v990_v41 = vsel %vm989_vm9, %v987_v38, %v970_v40 }
 0x588   : > { %v975_v43 = vpop.permute.xlu1 %974 }
 0x589   : > { %v991_v23 = vsel %vm989_vm9, %v988_v26, %v975_v43 }
 0x58d   : > { %v980_v11 = vpop.permute.xlu1 %979 }
 0x58e   : > { %v993_v36 = vsel %vm992_vm10, %v990_v41, %v980_v11 }
 0x58f   : > { %v997_v30 = vmul.f32 %v995_v25, %v993_v36 }
 0x591   : > { %v985_v45 = vpop.permute.xlu1 %984 }
 0x592   : > { %v994_v49 = vsel %vm992_vm10, %v991_v23, %v985_v45 }
 0x5be   : > { %v595_v51 = vpop.xlane.xlu0 %594 }
 0x5bf   : > { %v937_v0 = vsel %vm917_vm5, %v457_v20, %v595_v51  ;;  %v998_v20 = vmul.f32 %v996_v28, %v994_v49 }
 0x5c2   : > { %v598_v57 = vpop.xlane.xlu0 %597 }
 0x5c3   : > { %v938_v8 = vsel %vm917_vm5, %v460_v33, %v598_v57 }
 0x5c6   : > { %v730_v58 = vpop.xlane.xlu1 %729 }
 0x5c7   : > { %v939_v3 = vsel %vm920_vm6, %v937_v0, %v730_v58 }
 0x5ca   : > { %v733_v4 = vpop.xlane.xlu0 %732 }
 0x5cb   : > { %v940_v9 = vsel %vm920_vm6, %v938_v8, %v733_v4 }
 0x5cf   : > { %v865_v42 = vpop.xlane.xlu1 %864 }
 0x5d0   : > { %v941_v54 = vsel %vm923_vm7, %v939_v3, %v865_v42 }
 0x5d1   : > { %v943_v7 = vadd.f32 %v941_v54, %v935_v5 }
 0x5d3   : > { %945 = vst.msk [vmem:[#allocation4] sm:$0xff] %vm926_vm8, %v943_v7  ;;  %v868_v47 = vpop.xlane.xlu0 %867 }
 0x5d4   : > { %v942_v50 = vsel %vm923_vm7, %v940_v9, %v868_v47 }
 0x5d5   : > { %v944_v10 = vadd.f32 %v942_v50, %v936_v37 }
 0x5d7   : > { %946 = vst.msk [vmem:[#allocation4 + $0x8] sm:$0xff] %vm926_vm8, %v944_v10 }
 0x610   : > { %v640_v21 = vpop.f32.mrb[4].mxu0 }
 0x611   : > { %1001 = vrot.lane.b32.xlu1 %v640_v21, %s2687_s14  ;;  %v2066_v53 = vpop.f32.mrb[5].mxu0 }
 0x612   : > { %v643_v12 = vpop.f32.mrb[6].mxu0 }
 0x613   : > { %v2067_v24 = vpop.f32.mrb[7].mxu0 }
 0x615   : > { %1003 = vrot.lane.b32.xlu1 %v643_v12, %s2687_s14 }
 0x618   : > { %v775_v13 = vpop.f32.mrb[8].mxu0 }
 0x619   : > { %1009 = vrot.lane.b32.xlu0 %v775_v13, %s2686_s25  ;;  %v2078_v14 = vpop.f32.mrb[9].mxu0 }
 0x61a   : > { %v778_v56 = vpop.f32.mrb[10].mxu0 }
 0x61b   : > { %1011 = vrot.lane.b32.xlu1 %v778_v56, %s2686_s25  ;;  %v2079_v15 = vpop.f32.mrb[11].mxu0 }
 0x620   : > { %v910_v59 = vpop.f32.mrb[12].mxu0 }
 0x621   : > { %1017 = vrot.lane.b32.xlu0 %v910_v59, %s2685_s3  ;;  %v2090_v16 = vpop.f32.mrb[13].mxu0 }
 0x622   : > { %v913_v17 = vpop.f32.mrb[14].mxu0 }
 0x623   : > { %1019 = vrot.lane.b32.xlu1 %v913_v17, %s2685_s3  ;;  %v2091_v18 = vpop.f32.mrb[15].mxu0 }
 0x683   : > { %v1002_v19 = vpop.permute.xlu1 %1001 }
 0x684   : > { %v1023_v29 = vsel %vm376_vm2, %v3163_v46, %v1002_v19 }
 0x687   : > { %v1004_v62 = vpop.permute.xlu1 %1003 }
 0x688   : > { %v1024_v33 = vsel %vm376_vm2, %v3165_v48, %v1004_v62 }
 0x68b   : > { %v1010_v22 = vpop.permute.xlu0 %1009 }
 0x68c   : > { %v1025_v31 = vsel %vm989_vm9, %v1023_v29, %v1010_v22 }
 0x68d   : > { %v1012_v2 = vpop.permute.xlu1 %1011 }
 0x68e   : > { %v1026_v35 = vsel %vm989_vm9, %v1024_v33, %v1012_v2 }
 0x693   : > { %v1018_v32 = vpop.permute.xlu0 %1017 }
 0x694   : > { %v1027_v34 = vsel %vm992_vm10, %v1025_v31, %v1018_v32 }
 0x695   : > { %v1029_v38 = vadd.f32 %v1027_v34, %v997_v30  ;;  %v1020_v27 = vpop.permute.xlu1 %1019 }
 0x696   : > { %v1028_v39 = vsel %vm992_vm10, %v1026_v35, %v1020_v27 }
 0x697   : > { %1031 = vst [vmem:[#allocation5] sm:$0xff] %v1029_v38  ;;  %v1030_v26 = vadd.f32 %v1028_v39, %v998_v20 }
 0x699   : > { %1032 = vst [vmem:[#allocation5 + $0x8] sm:$0xff] %v1030_v26 }
 0x69a PF: > { %p1979_p0 = scmp.lt.s32.totalorder %s3095_s20, %s3093_s22 }
 0x69b   : > { %v2373_v46 = vld [vmem:[%s265_s16] sm:$0xff] (!%p1979_p0)   ;;  %v2691_v48 = vmov (!%p1979_p0), 0.0   ;;  %vm1064_vm11 = vcmask (!%p1979_p0), 261120   ;;  %vm2692_vm12 = vmmov (!%p1979_p0), 0   ;;  %v1044_v43 = vlaneseq (!%p1979_p0)  ;;  %s1980_s18 = sshll.u32 (!%p1979_p0), %s3093_s22, 4  ;;  %s1981_s21 = sshll.u32 (!%p1979_p0), %s3095_s20, 4 }
 0x69c   : > { %1035 = sbr.rel (%p1979_p0) target bundleno = 3079 (0xc07), region = 56  ;;  %2092 = vmatprep.subr.bf16.mxu0 (!%p1979_p0), %v2691_v48  ;;  %2098 = vmatprep.subr.bf16.mxu1 (!%p1979_p0), %v2691_v48  ;;  %v1069_v40 = vsel (!%p1979_p0), %vm1064_vm11, %v2373_v46, 0  ;;  %v1058_v41 = vld [vmem:[#allocation2] sm:$0xff] (!%p1979_p0)  ;;  %v1048_v36 = vstv (!%p1979_p0), %s1980_s18  ;;  %v1054_v45 = vstv (!%p1979_p0), %s1981_s21  ;;  %vm1114_vm14 = vcmask (!%p1979_p0), 130048   ;;  %s2694_s13 = smov (!%p1979_p0), 96   ;;  %v3363_v6 = vld [vmem:[#allocation3 + $0x8] sm:$0xff] (!%p1979_p0) }
 0x69d   : > { %2094 = vmatprep.mubr.msk.bf16.mxu0 (!%p1979_p0), %vm2692_vm12, %v2691_v48  ;;  %2100 = vmatprep.mubr.msk.bf16.mxu1 (!%p1979_p0), %vm2692_vm12, %v2691_v48  ;;  %v1045_v23 = vshrl.u32 (!%p1979_p0), %v1044_v43, 7  ;;  %v1052_v11 = vand.u32 (!%p1979_p0), 127, %v1044_v43  ;;  %v2693_v5 = vmov (!%p1979_p0), 0   ;;  %v3358_v42 = vld [vmem:[#allocation3] sm:$0xff] (!%p1979_p0)  ;;  %s2695_s11 = smov (!%p1979_p0), 64   ;;  %v3373_v8 = vld [vmem:[%s274_s27] sm:$0xff] (!%p1979_p0)  }
 0x69e   : > { %2093 = vmatpush3.bf16.xpose.msra.mxu0 (!%p1979_p0), %v1069_v40  ;;  %2362 = vset.pattern.permute.xlu1 (!%p1979_p0), %v2693_v5  ;;  %s2696_s16 = smov (!%p1979_p0), 32   ;;  %v1203_v15 = vld [vmem:[#allocation2 + $0x8] sm:$0xff] (!%p1979_p0)  ;;  %v1340_v17 = vld [vmem:[#allocation2 + $0x10] sm:$0xff] (!%p1979_p0)  ;;  %v1477_v19 = vld [vmem:[#allocation2 + $0x18] sm:$0xff] (!%p1979_p0)  ;;  %vm1613_vm0 = vcmask (!%p1979_p0), 7168   ;;  %vm1616_vm1 = vcmask (!%p1979_p0), 15360  }
 0x69f   : > { %2110 = vmatprep.subr.bf16.mxu0 (!%p1979_p0), %v2691_v48  ;;  %v1046_v49 = vadd.s32 (!%p1979_p0), 8, %v1045_v23  ;;  %v3338_v51 = vadd.s32 (!%p1979_p0), %v1048_v36, %v1045_v23  ;;  %v3340_v52 = vadd.s32 (!%p1979_p0), %v1054_v45, %v1052_v11  ;;  %2099 = vmatpush3.bf16.msra.mxu1 (!%p1979_p0), %v3373_v8  ;;  %vm1619_vm2 = vcmask (!%p1979_p0), 23552  }
 0x6a0   : > { %2104 = vmatprep.subr.bf16.mxu1 (!%p1979_p0), %v2691_v48  ;;  %vm1622_vm3 = vcmask (!%p1979_p0), 31744   ;;  %vm1685_vm4 = vcmask (!%p1979_p0), 523264   ;;  %vm1688_vm5 = vcmask (!%p1979_p0), 785408  }
 0x6a1   : > { %v3342_v57 = vadd.s32 (!%p1979_p0), %v1048_v36, %v1046_v49  ;;  %vm1056_vm13 = vcmp.ge.s32.totalorder (!%p1979_p0), %v3338_v51, %v3340_v52  ;;  %v2697_v49 = vmov (!%p1979_p0), 1  }
 0x6a2   : > { %2364 = vset.pattern.permute.xlu0 (!%p1979_p0), %v2697_v49 }
 0x6a3   : > { %vm1057_vm15 = vcmp.ge.s32.totalorder %v3342_v57, %v3340_v52 }
 0x6a5   : > { %2095 = vmatmul.mubr.msk.bf16.vlgmr.msra.gmra.mrb[0].mxu0 %vm1064_vm11, %v1058_v41 }
 0x6a6   : > { %2112 = vmatprep.mubr.msk.bf16.mxu0 %vm2692_vm12, %v2691_v48 }
 0x778   : > { %v1105_v58 = vpop.f32.mrb[0].mxu0 }
 0x779   : > { %v1112_v60 = vsel %vm1056_vm13, %v1105_v58, -1e+30  ;;  %v2096_v61 = vpop.f32.mrb[1].mxu0 }
 0x77a   : > { %v1108_v63 = vpop.f32.mrb[2].mxu0  ;;  %v1115_v0 = vsel %vm1114_vm14, %v1112_v60, -inf }
 0x77b   : > { %v1113_v1 = vsel %vm1057_vm15, %v1108_v63, -1e+30  ;;  %1116 = vmax.xlane.f32.xlu0 %v1115_v0  ;;  %v2097_v3 = vpop.f32.mrb[3].mxu0 }
 0x77c   : > { %v1118_v4 = vsel %vm1114_vm14, %v1113_v1, -inf  ;;  %v2698_v3 = vmov 2  }
 0x77f   : > { %1119 = vmax.xlane.f32.xlu0 %v1118_v4 }
 0x795   : > { %1204 = vrot.lane.b32.xlu0 %v2373_v46, %s2694_s13 }
 0x808   : > { %v1117_v44 = vpop.xlane.xlu0 %1116 }
 0x809   : > { %v3361_v54 = vmax.f32 %v3358_v42, %v1117_v44 }
 0x80b   : > { %1131 = vperm.xlu1 %2362, %v3361_v54  }
 0x80c   : > { %v1120_v55 = vpop.xlane.xlu0 %1119 }
 0x80d   : > { %v3367_v7 = vmax.f32 %v3363_v6, %v1120_v55 }
 0x80f   : > { %1136 = vperm.xlu1 %2362, %v3367_v7  }
 0x810   : > { %v1205_v53 = vpop.permute.xlu0 %1204 }
 0x811   : > { %v1210_v13 = vsel %vm1064_vm11, %v1205_v53, 0 }
 0x813   : > { %1341 = vrot.lane.b32.xlu1 %v2373_v46, %s2695_s11 }
 0x814   : > { %2363 = vset.pattern.permute.xlu1 %v2697_v49 }
 0x817   : > { %1478 = vrot.lane.b32.xlu1 %v2373_v46, %s2696_s16 }
 0x88a   : > { %v1132_v9 = vpop.permute.xlu1 %1131 }
 0x88b   : > { %v1139_v37 = vsub.f32 %v1112_v60, %v1132_v9 }
 0x88d   : > { %v1141_v47 = vmul.f32 1.442695, %v1139_v37 }
 0x88e   : > { %v1137_v50 = vpop.permute.xlu1 %1136 }
 0x88f   : > { %v1140_v10 = vsub.f32 %v1113_v1, %v1137_v50  ;;  %2375 = vpow2.f32 %v1141_v47 }
 0x891   : > { %v1143_v21 = vmul.f32 1.442695, %v1140_v10 }
 0x892   : > { %v1342_v56 = vpop.permute.xlu1 %1341 }
 0x893   : > { %2377 = vpow2.f32 %v1143_v21  ;;  %v1347_v59 = vsel %vm1064_vm11, %v1342_v56, 0 }
 0x896   : > { %v1479_v16 = vpop.permute.xlu1 %1478 }
 0x897   : > { %v1484_v18 = vsel %vm1064_vm11, %v1479_v16, 0 }
 0x899   : > { %v3378_v12 = vpop.eup %2375 }
 0x89d   : > { %v3380_v24 = vpop.eup %2377 }
 0x89e   : > { %v1151_v14 = vpack.c.bf16 %v3380_v24, %v3378_v12 }
 0x8a0   : > { %2101 = vmatmul.mubr.msk.bf16.vlgmr.msra.gmra.mrb[0].mxu1 %vm1114_vm14, %v1151_v14 }
 0x8a1   : > { %2105 = vmatpush3.bf16.xpose.msra.mxu1 %v1210_v13  ;;  %2106 = vmatprep.mubr.msk.bf16.mxu1 %vm2692_vm12, %v2691_v48  ;;  %v2699_v13 = vmov 3  }
 0x8a2   : > { %2116 = vmatprep.subr.bf16.mxu1 %v2691_v48 }
 0x8a8   : > { %2107 = vmatmul.mubr.msk.bf16.vlgmr.msra.gmra.mrb[4].mxu1 %vm1064_vm11, %v1203_v15  ;;  %v1145_v15 = vsel %vm1114_vm14, %v3378_v12, 0.0  ;;  %v1148_v12 = vsel %vm1114_vm14, %v3380_v24, 0.0 }
 0x8a9   : > { %2117 = vmatpush3.bf16.xpose.msra.mxu1 %v1347_v59  ;;  %2118 = vmatprep.mubr.msk.bf16.mxu1 %vm2692_vm12, %v2691_v48  ;;  %v1124_v59 = vsub.f32 %v3363_v6, %v3367_v7 }
 0x8aa   : > { %2128 = vmatprep.subr.bf16.mxu1 %v2691_v48 }
 0x8ab   : > { %v1127_v16 = vmul.f32 1.442695, %v1124_v59 }
 0x8ad   : > { %2379 = vpow2.f32 %v1127_v16 }
 0x8b0   : > { %2119 = vmatmul.mubr.msk.bf16.vlgmr.msra.gmra.mrb[8].mxu1 %vm1064_vm11, %v1340_v17 }
 0x8b1   : > { %2129 = vmatpush3.bf16.xpose.msra.mxu1 %v1484_v18  ;;  %2130 = vmatprep.mubr.msk.bf16.mxu1 %vm2692_vm12, %v2691_v48 }
 0x8b7   : > { %v3476_v17 = vpop.eup %2379 }
 0x8b8   : > { %2131 = vmatmul.mubr.msk.bf16.vlgmr.msra.gmra.mrb[12].mxu1 %vm1064_vm11, %v1477_v19 }
 0x973   : > { %v3399_v62 = vpop.f32.mrb[0].mxu1 }
 0x974   : > { %v2102_v22 = vpop.f32.mrb[1].mxu1 }
 0x975   : > { %v3401_v25 = vpop.f32.mrb[2].mxu1 }
 0x976   : > { %v2103_v2 = vpop.f32.mrb[3].mxu1 }
 0x97b   : > { %v1246_v28 = vpop.f32.mrb[4].mxu1 }
 0x97c   : > { %v3406_v29 = vsel %vm1056_vm13, %v1246_v28, -1e+30  ;;  %v2108_v30 = vpop.f32.mrb[5].mxu1 }
 0x97d   : > { %v1249_v31 = vpop.f32.mrb[6].mxu1  ;;  %v1255_v32 = vsel %vm1114_vm14, %v3406_v29, -inf }
 0x97e   : > { %v3413_v33 = vsel %vm1057_vm15, %v1249_v31, -1e+30  ;;  %1256 = vmax.xlane.f32.xlu1 %v1255_v32  ;;  %v2109_v34 = vpop.f32.mrb[7].mxu1 }
 0x97f   : > { %v1258_v20 = vsel %vm1114_vm14, %v3413_v33, -inf }
 0x980   : > { %1259 = vmax.xlane.f32.xlu0 %v1258_v20 }
 0x983   : > { %v1383_v35 = vpop.f32.mrb[8].mxu1 }
 0x984   : > { %v3420_v38 = vsel %vm1056_vm13, %v1383_v35, -1e+30  ;;  %v2120_v27 = vpop.f32.mrb[9].mxu1 }
 0x985   : > { %v1386_v39 = vpop.f32.mrb[10].mxu1  ;;  %v1392_v26 = vsel %vm1114_vm14, %v3420_v38, -inf }
 0x986   : > { %v3427_v46 = vsel %vm1057_vm15, %v1386_v39, -1e+30  ;;  %1393 = vmax.xlane.f32.xlu1 %v1392_v26  ;;  %v2121_v40 = vpop.f32.mrb[11].mxu1 }
 0x987   : > { %v1395_v41 = vsel %vm1114_vm14, %v3427_v46, -inf }
 0x98a   : > { %1396 = vmax.xlane.f32.xlu1 %v1395_v41 }
 0x98b   : > { %v1520_v43 = vpop.f32.mrb[12].mxu1 }
 0x98c   : > { %v3434_v23 = vsel %vm1056_vm13, %v1520_v43, -1e+30  ;;  %v2132_v11 = vpop.f32.mrb[13].mxu1 }
 0x98d   : > { %v1523_v36 = vpop.f32.mrb[14].mxu1  ;;  %v1529_v45 = vsel %vm1114_vm14, %v3434_v23, -inf }
 0x98e   : > { %v3443_v58 = vsel %vm1057_vm15, %v1523_v36, -1e+30  ;;  %1530 = vmax.xlane.f32.xlu1 %v1529_v45  ;;  %v2133_v60 = vpop.f32.mrb[15].mxu1 }
 0x98f   : > { %v1532_v51 = vsel %vm1114_vm14, %v3443_v58, -inf }
 0x990   : > { %1533 = vmax.xlane.f32.xlu0 %v1532_v51 }
 0xa0b   : > { %v1257_v61 = vpop.xlane.xlu1 %1256 }
 0xa0c   : > { %v1261_v63 = vmax.f32 %v3358_v42, %v1257_v61 }
 0xa0d   : > { %v1260_v0 = vpop.xlane.xlu0 %1259 }
 0xa0e   : > { %v1262_v1 = vmax.f32 %v3363_v6, %v1260_v0  ;;  %1271 = vperm.xlu1 %2363, %v1261_v63   ;;  %v1614_v9 = vsel %vm1613_vm0, %v3361_v54, %v1261_v63 }
 0xa10   : > { %1276 = vperm.xlu0 %2364, %v1262_v1   ;;  %v1615_v10 = vsel %vm1613_vm0, %v3367_v7, %v1262_v1  ;;  %v1264_v7 = vsub.f32 %v3363_v6, %v1262_v1 }
 0xa12   : > { %2365 = vset.pattern.permute.xlu1 %v2698_v3  ;;  %v1267_v22 = vmul.f32 1.442695, %v1264_v7 }
 0xa13   : > { %v1394_v52 = vpop.xlane.xlu1 %1393 }
 0xa14   : > { %v1398_v57 = vmax.f32 %v3358_v42, %v1394_v52  ;;  %2368 = vset.pattern.permute.xlu0 %v2693_v5 }
 0xa16   : > { %1408 = vperm.xlu1 %2365, %v1398_v57   ;;  %v1617_v47 = vsel %vm1616_vm1, %v1614_v9, %v1398_v57  ;;  %v1400_v2 = vsub.f32 %v3358_v42, %v1398_v57 }
 0xa17   : > { %v1397_v4 = vpop.xlane.xlu1 %1396 }
 0xa18   : > { %v1399_v44 = vmax.f32 %v3363_v6, %v1397_v4  ;;  %v1402_v30 = vmul.f32 1.442695, %v1400_v2 }
 0xa1a   : > { %1413 = vperm.xlu1 %2365, %v1399_v44   ;;  %v1618_v14 = vsel %vm1616_vm1, %v1615_v10, %v1399_v44 }
 0xa1b   : > { %v1531_v55 = vpop.xlane.xlu1 %1530 }
 0xa1c   : > { %v1535_v37 = vmax.f32 %v3358_v42, %v1531_v55 }
 0xa1d   : > { %v1534_v50 = vpop.xlane.xlu0 %1533 }
 0xa1e   : > { %v1620_v21 = vsel %vm1619_vm2, %v1617_v47, %v1535_v37  ;;  %v1536_v53 = vmax.f32 %v3363_v6, %v1534_v50  ;;  %2366 = vset.pattern.permute.xlu1 %v2699_v13  ;;  %v1537_v32 = vsub.f32 %v3358_v42, %v1535_v37 }
 0xa1f   : > { %1623 = vst.msk [vmem:[#allocation3] sm:$0xff] %vm1622_vm3, %v1620_v21  ;;  %1545 = vperm.xlu1 %2366, %v1535_v37  }
 0xa20   : > { %v1621_v56 = vsel %vm1619_vm2, %v1618_v14, %v1536_v53  ;;  %v1539_v20 = vmul.f32 1.442695, %v1537_v32  ;;  %v1538_v35 = vsub.f32 %v3363_v6, %v1536_v53 }
 0xa21   : > { %1624 = vst.msk [vmem:[#allocation3 + $0x8] sm:$0xff] %vm1622_vm3, %v1621_v56 }
 0xa22   : > { %v1541_v27 = vmul.f32 1.442695, %v1538_v35 }
 0xa23   : > { %1550 = vperm.xlu1 %2366, %v1536_v53  }
 0xa27   : > { %1292 = vrot.lane.b32.xlu1 %v3373_v8, %s2694_s13 }
 0xa28   : > { %2367 = vset.pattern.permute.xlu1 %v2693_v5  ;;  %v1123_v5 = vsub.f32 %v3358_v42, %v3361_v54  ;;  %v1401_v54 = vsub.f32 %v3363_v6, %v1399_v44 }
 0xa2a   : > { %v1125_v18 = vmul.f32 1.442695, %v1123_v5  ;;  %v1404_v24 = vmul.f32 1.442695, %v1401_v54 }
 0xa2b   : > { %1429 = vrot.lane.b32.xlu1 %v3373_v8, %s2695_s11 }
 0xa2c   : > { %2381 = vpow2.f32 %v1125_v18 }
 0xa2f   : > { %1146 = vadd.xlane.f32.xlu0 %v1145_v15  ;;  %1566 = vrot.lane.b32.xlu1 %v3373_v8, %s2696_s16  ;;  %v1263_v8 = vsub.f32 %v3358_v42, %v1261_v63 }
 0xa31   : > { %v1265_v19 = vmul.f32 1.442695, %v1263_v8 }
 0xa33   : > { %2383 = vpow2.f32 %v1265_v19 }
 0xa34   : > { %2385 = vpow2.f32 %v1267_v22 }
 0xa35   : > { %2387 = vpow2.f32 %v1402_v30 }
 0xa36   : > { %v3486_v28 = vpop.eup %2381  ;;  %2389 = vpow2.f32 %v1404_v24 }
 0xa37   : > { %2391 = vpow2.f32 %v1539_v20 }
 0xa38   : > { %2393 = vpow2.f32 %v1541_v27 }
 0xa3d   : > { %v3490_v31 = vpop.eup %2383 }
 0xa3e   : > { %v3495_v34 = vpop.eup %2385  ;;  %v1625_v27 = vsel %vm1613_vm0, %v3486_v28, %v3490_v31 }
 0xa3f   : > { %v3499_v39 = vpop.eup %2387 }
 0xa40   : > { %v3503_v42 = vpop.eup %2389 }
 0xa41   : > { %v3506_v26 = vpop.eup %2391 }
 0xa42   : > { %v3509_v6 = vpop.eup %2393 }
 0xa45   : > { %1650 = vperm.xlu0 %2368, %v3476_v17  }
 0xa49   : > { %2372 = vset.pattern.permute.xlu0 %v2699_v13 }
 0xa53   : > { %1149 = vadd.xlane.f32.xlu1 %v1148_v12 }
 0xa64   : > { %1645 = vperm.xlu1 %2367, %v3486_v28  }
 0xa68   : > { %2369 = vset.pattern.permute.xlu1 %v2697_v49 }
 0xa69   : > { %1655 = vperm.xlu1 %2369, %v3490_v31  }
 0xa6d   : > { %1660 = vperm.xlu1 %2369, %v3495_v34  }
 0xa71   : > { %2370 = vset.pattern.permute.xlu1 %v2698_v3 }
 0xa72   : > { %1665 = vperm.xlu1 %2370, %v3499_v39  }
 0xa76   : > { %1670 = vperm.xlu1 %2370, %v3503_v42  }
 0xa7a   : > { %2371 = vset.pattern.permute.xlu1 %v2699_v13 }
 0xa7b   : > { %1675 = vperm.xlu1 %2371, %v3506_v26  }
 0xa7f   : > { %1680 = vperm.xlu1 %2371, %v3509_v6  }
 0xa8d   : > { %v1272_v40 = vpop.permute.xlu1 %1271 }
 0xa8e   : > { %v1279_v41 = vsub.f32 %v3406_v29, %v1272_v40 }
 0xa8f   : > { %v1277_v43 = vpop.permute.xlu0 %1276 }
 0xa90   : > { %v1281_v11 = vmul.f32 1.442695, %v1279_v41  ;;  %v1280_v36 = vsub.f32 %v3413_v33, %v1277_v43  ;;  %v1627_v43 = vsel %vm1616_vm1, %v1625_v27, %v3499_v39 }
 0xa92   : > { %2395 = vpow2.f32 %v1281_v11  ;;  %v1283_v45 = vmul.f32 1.442695, %v1280_v36  ;;  %v1042_v11 = vld [vmem:[#allocation4] sm:$0xff]  ;;  %v1629_v36 = vsel %vm1619_vm2, %v1627_v43, %v3506_v26 }
 0xa94   : > { %2397 = vpow2.f32 %v1283_v45 }
 0xa95   : > { %v1409_v49 = vpop.permute.xlu1 %1408 }
 0xa96   : > { %v1416_v60 = vsub.f32 %v3420_v38, %v1409_v49  ;;  %v1626_v49 = vsel %vm1613_vm0, %v3476_v17, %v3495_v34 }
 0xa97   : > { %v1628_v31 = vsel %vm1616_vm1, %v1626_v49, %v3503_v42 }
 0xa98   : > { %v1418_v51 = vmul.f32 1.442695, %v1416_v60  ;;  %v1630_v26 = vsel %vm1619_vm2, %v1628_v31, %v3509_v6 }
 0xa99   : > { %v1414_v61 = vpop.permute.xlu1 %1413 }
 0xa9a   : > { %2399 = vpow2.f32 %v1418_v51  ;;  %v1417_v63 = vsub.f32 %v3427_v46, %v1414_v61  ;;  %v1631_v61 = vmul.f32 %v1629_v36, %v1042_v11 }
 0xa9c   : > { %v2396_v0 = vpop.eup %2395  ;;  %v1420_v1 = vmul.f32 1.442695, %v1417_v63  ;;  %v1043_v63 = vld [vmem:[#allocation4 + $0x8] sm:$0xff] }
 0xa9d   : > { %v1285_v3 = vsel %vm1114_vm14, %v2396_v0, 0.0  ;;  %v1632_v17 = vmul.f32 %v1630_v26, %v1043_v63 }
 0xa9e   : > { %v2398_v29 = vpop.eup %2397  ;;  %2401 = vpow2.f32 %v1420_v1  ;;  %v1546_v52 = vpop.permute.xlu1 %1545  ;;  %1286 = vadd.xlane.f32.xlu0 %v1285_v3 }
 0xa9f   : > { %v1553_v33 = vsub.f32 %v3434_v23, %v1546_v52  ;;  %v1288_v4 = vsel %vm1114_vm14, %v2398_v29, 0.0  ;;  %v1291_v50 = vpack.c.bf16 %v2398_v29, %v2396_v0 }
 0xaa1   : > { %v1555_v57 = vmul.f32 1.442695, %v1553_v33 }
 0xaa2   : > { %v1551_v44 = vpop.permute.xlu1 %1550  ;;  %1289 = vadd.xlane.f32.xlu0 %v1288_v4 }
 0xaa3   : > { %2403 = vpow2.f32 %v1555_v57  ;;  %v1554_v38 = vsub.f32 %v3443_v58, %v1551_v44 }
 0xaa4   : > { %v2400_v55 = vpop.eup %2399 }
 0xaa5   : > { %v1557_v46 = vmul.f32 1.442695, %v1554_v38  ;;  %v1422_v9 = vsel %vm1114_vm14, %v2400_v55, 0.0 }
 0xaa6   : > { %v1293_v37 = vpop.permute.xlu1 %1292  ;;  %1423 = vadd.xlane.f32.xlu1 %v1422_v9 }
 0xaa7   : > { %2405 = vpow2.f32 %v1557_v46  ;;  %2111 = vmatpush3.bf16.msra.mxu0 %v1293_v37 }
 0xaa8   : > { %v2402_v47 = vpop.eup %2401  ;;  %2122 = vmatprep.subr.bf16.mxu0 %v2691_v48 }
 0xaa9   : > { %v1425_v23 = vsel %vm1114_vm14, %v2402_v47, 0.0  ;;  %v1428_v53 = vpack.c.bf16 %v2402_v47, %v2400_v55 }
 0xaaa   : > { %2113 = vmatmul.mubr.msk.bf16.vlgmr.msra.gmra.mrb[4].mxu0 %vm1114_vm14, %v1291_v50  ;;  %1426 = vadd.xlane.f32.xlu0 %v1425_v23  ;;  %v1430_v10 = vpop.permute.xlu1 %1429 }
 0xaab   : > { %2123 = vmatpush3.bf16.msra.mxu0 %v1430_v10  ;;  %2124 = vmatprep.mubr.msk.bf16.mxu0 %vm2692_vm12, %v2691_v48 }
 0xaac   : > { %2134 = vmatprep.subr.bf16.mxu0 %v2691_v48 }
 0xaad   : > { %v2404_v58 = vpop.eup %2403 }
 0xaae   : > { %v1559_v21 = vsel %vm1114_vm14, %v2404_v58, 0.0  ;;  %v1567_v13 = vpop.permute.xlu1 %1566 }
 0xaaf   : > { %1560 = vadd.xlane.f32.xlu1 %v1559_v21 }
 0xab1   : > { %v2406_v14 = vpop.eup %2405 }
 0xab2   : > { %2125 = vmatmul.mubr.msk.bf16.vlgmr.msra.gmra.mrb[8].mxu0 %vm1114_vm14, %v1428_v53  ;;  %v1562_v56 = vsel %vm1114_vm14, %v2406_v14, 0.0  ;;  %v1565_v15 = vpack.c.bf16 %v2406_v14, %v2404_v58  ;;  %v1691_v58 = vld [vmem:[#allocation5] sm:$0xff]  ;;  %v1692_v53 = vld [vmem:[#allocation5 + $0x8] sm:$0xff] }
 0xab3   : > { %1563 = vadd.xlane.f32.xlu0 %v1562_v56  ;;  %2135 = vmatpush3.bf16.msra.mxu0 %v1567_v13 }
 0xab4   : > { %2136 = vmatprep.mubr.msk.bf16.mxu0 %vm2692_vm12, %v2691_v48 }
 0xaba   : > { %2137 = vmatmul.mubr.msk.bf16.vlgmr.msra.gmra.mrb[12].mxu0 %vm1114_vm14, %v1565_v15 }
 0xabc   : > { %v1147_v5 = vpop.xlane.xlu0 %1146 }
 0xac4   : > { %v1651_v8 = vpop.permute.xlu0 %1650 }
 0xae0   : > { %v1150_v59 = vpop.xlane.xlu1 %1149 }
 0xae4   : > { %v1646_v16 = vpop.permute.xlu1 %1645 }
 0xae8   : > { %v1656_v12 = vpop.permute.xlu1 %1655 }
 0xae9   : > { %v1683_v18 = vsel %vm1064_vm11, %v1646_v16, %v1656_v12 }
 0xaec   : > { %v1661_v19 = vpop.permute.xlu1 %1660 }
 0xaed   : > { %v1684_v7 = vsel %vm1064_vm11, %v1651_v8, %v1661_v19 }
 0xaf1   : > { %v1666_v22 = vpop.permute.xlu1 %1665 }
 0xaf2   : > { %v1686_v2 = vsel %vm1685_vm4, %v1683_v18, %v1666_v22 }
 0xaf5   : > { %v1671_v30 = vpop.permute.xlu1 %1670 }
 0xaf6   : > { %v1687_v48 = vsel %vm1685_vm4, %v1684_v7, %v1671_v30 }
 0xafa   : > { %v1676_v54 = vpop.permute.xlu1 %1675 }
 0xafb   : > { %v1689_v24 = vsel %vm1688_vm5, %v1686_v2, %v1676_v54 }
 0xafc   : > { %v1693_v14 = vmul.f32 %v1691_v58, %v1689_v24 }
 0xafe   : > { %v1681_v32 = vpop.permute.xlu1 %1680 }
 0xaff   : > { %v1690_v20 = vsel %vm1688_vm5, %v1687_v48, %v1681_v32 }
 0xb2b   : > { %v1287_v35 = vpop.xlane.xlu0 %1286 }
 0xb2c   : > { %v1633_v45 = vsel %vm1613_vm0, %v1147_v5, %v1287_v35  ;;  %v1694_v5 = vmul.f32 %v1692_v53, %v1690_v20 }
 0xb2f   : > { %v1290_v40 = vpop.xlane.xlu0 %1289 }
 0xb30   : > { %v1634_v1 = vsel %vm1613_vm0, %v1150_v59, %v1290_v40 }
 0xb33   : > { %v1424_v41 = vpop.xlane.xlu1 %1423 }
 0xb34   : > { %v1635_v60 = vsel %vm1616_vm1, %v1633_v45, %v1424_v41 }
 0xb37   : > { %v1427_v51 = vpop.xlane.xlu0 %1426 }
 0xb38   : > { %v1636_v3 = vsel %vm1616_vm1, %v1634_v1, %v1427_v51 }
 0xb3c   : > { %v1561_v28 = vpop.xlane.xlu1 %1560 }
 0xb3d   : > { %v1637_v39 = vsel %vm1619_vm2, %v1635_v60, %v1561_v28 }
 0xb3e   : > { %v1639_v0 = vadd.f32 %v1637_v39, %v1631_v61 }
 0xb40   : > { %1641 = vst.msk [vmem:[#allocation4] sm:$0xff] %vm1622_vm3, %v1639_v0  ;;  %v1564_v34 = vpop.xlane.xlu0 %1563 }
 0xb41   : > { %v1638_v29 = vsel %vm1619_vm2, %v1636_v3, %v1564_v34 }
 0xb42   : > { %v1640_v52 = vadd.f32 %v1638_v29, %v1632_v17 }
 0xb44   : > { %1642 = vst.msk [vmem:[#allocation4 + $0x8] sm:$0xff] %vm1622_vm3, %v1640_v52 }
 0xb7d   : > { %v1332_v42 = vpop.f32.mrb[4].mxu0 }
 0xb7e   : > { %1697 = vrot.lane.b32.xlu1 %v1332_v42, %s2696_s16  ;;  %v2114_v33 = vpop.f32.mrb[5].mxu0 }
 0xb7f   : > { %v1335_v57 = vpop.f32.mrb[6].mxu0 }
 0xb80   : > { %v2115_v6 = vpop.f32.mrb[7].mxu0 }
 0xb82   : > { %1699 = vrot.lane.b32.xlu1 %v1335_v57, %s2696_s16 }
 0xb85   : > { %v1469_v4 = vpop.f32.mrb[8].mxu0 }
 0xb86   : > { %1705 = vrot.lane.b32.xlu0 %v1469_v4, %s2695_s11  ;;  %v2126_v44 = vpop.f32.mrb[9].mxu0 }
 0xb87   : > { %v1472_v38 = vpop.f32.mrb[10].mxu0 }
 0xb88   : > { %1707 = vrot.lane.b32.xlu1 %v1472_v38, %s2695_s11  ;;  %v2127_v55 = vpop.f32.mrb[11].mxu0 }
 0xb8d   : > { %v1606_v46 = vpop.f32.mrb[12].mxu0 }
 0xb8e   : > { %1713 = vrot.lane.b32.xlu0 %v1606_v46, %s2694_s13  ;;  %v2138_v9 = vpop.f32.mrb[13].mxu0 }
 0xb8f   : > { %v1609_v37 = vpop.f32.mrb[14].mxu0 }
 0xb90   : > { %1715 = vrot.lane.b32.xlu1 %v1609_v37, %s2694_s13  ;;  %v2139_v47 = vpop.f32.mrb[15].mxu0 }
 0xbf0   : > { %v1698_v50 = vpop.permute.xlu1 %1697 }
 0xbf1   : > { %v1719_v13 = vsel %vm1064_vm11, %v3399_v62, %v1698_v50 }
 0xbf4   : > { %v1700_v23 = vpop.permute.xlu1 %1699 }
 0xbf5   : > { %v1720_v59 = vsel %vm1064_vm11, %v3401_v25, %v1700_v23 }
 0xbf8   : > { %v1706_v10 = vpop.permute.xlu0 %1705 }
 0xbf9   : > { %v1721_v56 = vsel %vm1685_vm4, %v1719_v13, %v1706_v10 }
 0xbfa   : > { %v1708_v21 = vpop.permute.xlu1 %1707 }
 0xbfb   : > { %v1722_v12 = vsel %vm1685_vm4, %v1720_v59, %v1708_v21 }
 0xc00   : > { %v1714_v15 = vpop.permute.xlu0 %1713 }
 0xc01   : > { %v1723_v16 = vsel %vm1688_vm5, %v1721_v56, %v1714_v15 }
 0xc02   : > { %v1725_v18 = vadd.f32 %v1723_v16, %v1693_v14  ;;  %v1716_v8 = vpop.permute.xlu1 %1715 }
 0xc03   : > { %v1724_v19 = vsel %vm1688_vm5, %v1722_v12, %v1716_v8 }
 0xc04   : > { %1727 = vst [vmem:[#allocation5] sm:$0xff] %v1725_v18  ;;  %v1726_v7 = vadd.f32 %v1724_v19, %v1694_v5 }
 0xc06   : > { %1728 = vst [vmem:[#allocation5 + $0x8] sm:$0xff] %v1726_v7 }
 0xc07 PF: > { %p1729_p6 = scmp.lt.s32.totalorder %s3093_s22, 0 }
 0xc09   : > { %s3776_s22 = smov (!%p1729_p6, %s3093_s22), 0 }
 0xc0a   : > { %p1992_p12 = scmp.ne.s32.totalorder %s3095_s20, %s3776_s22 }
 0xc0b   : > { %v1735_v62 = vld [vmem:[#allocation4] sm:$0xff] (!%p1992_p12)  ;;  %v1736_v25 = vld [vmem:[#allocation4 + $0x8] sm:$0xff] (!%p1992_p12)  ;;  %v2700_v22 = vmov (!%p1992_p12), 1   ;;  %v2701_v2 = vmov (!%p1992_p12), 0   ;;  %v2702_v54 = vmov (!%p1992_p12), 2   ;;  %v2703_v24 = vmov (!%p1992_p12), 3  }
 0xc0c   : > { %1734 = sbr.rel (%p1992_p12) target bundleno = 3243 (0xcab), region = 60  ;;  %2408 = vset.pattern.permute.xlu1 (!%p1992_p12), %v2700_v22  ;;  %2407 = vset.pattern.permute.xlu0 (!%p1992_p12), %v2701_v2  ;;  %2413 = vrcp.f32 (!%p1992_p12), %v1735_v62  ;;  %vm1773_vm6 = vcmask (!%p1992_p12), 261120   ;;  %vm1776_vm7 = vcmask (!%p1992_p12), 523264   ;;  %vm1779_vm8 = vcmask (!%p1992_p12), 785408   ;;  %v1782_v36 = vld [vmem:[#allocation5] sm:$0xff] (!%p1992_p12) }
 0xc0d   : > { %2415 = vrcp.f32 (!%p1992_p12), %v1736_v25  ;;  %v1783_v45 = vld [vmem:[#allocation5 + $0x8] sm:$0xff] (!%p1992_p12) }
 0xc16   : > { %v2414_v30 = vpop.eup %2413 }
 0xc17   : > { %1750 = vperm.xlu1 %2408, %v2414_v30   ;;  %1741 = vperm.xlu0 %2407, %v2414_v30   ;;  %v2416_v48 = vpop.eup %2415 }
 0xc1b   : > { %1754 = vperm.xlu1 %2408, %v2416_v48   ;;  %1746 = vperm.xlu0 %2407, %v2416_v48  }
 0xc1f   : > { %2410 = vset.pattern.permute.xlu1 %v2702_v54  ;;  %2409 = vset.pattern.permute.xlu0 %v2702_v54 }
 0xc20   : > { %1762 = vperm.xlu1 %2410, %v2416_v48   ;;  %1758 = vperm.xlu0 %2409, %v2414_v30  }
 0xc24   : > { %2411 = vset.pattern.permute.xlu1 %v2703_v24  ;;  %2412 = vset.pattern.permute.xlu0 %v2703_v24 }
 0xc25   : > { %1766 = vperm.xlu1 %2411, %v2414_v30   ;;  %1770 = vperm.xlu0 %2412, %v2416_v48  }
 0xc96   : > { %v1751_v32 = vpop.permute.xlu1 %1750  ;;  %v1742_v20 = vpop.permute.xlu0 %1741 }
 0xc97   : > { %v1774_v43 = vsel %vm1773_vm6, %v1742_v20, %v1751_v32 }
 0xc9a   : > { %v1755_v35 = vpop.permute.xlu1 %1754  ;;  %v1747_v27 = vpop.permute.xlu0 %1746 }
 0xc9b   : > { %v1775_v11 = vsel %vm1773_vm6, %v1747_v27, %v1755_v35 }
 0xc9f   : > { %v1763_v40 = vpop.permute.xlu1 %1762  ;;  %v1759_v41 = vpop.permute.xlu0 %1758 }
 0xca0   : > { %v1778_v49 = vsel %vm1776_vm7, %v1775_v11, %v1763_v40  ;;  %v1777_v60 = vsel %vm1776_vm7, %v1774_v43, %v1759_v41 }
 0xca4   : > { %v1767_v51 = vpop.permute.xlu1 %1766  ;;  %v1771_v61 = vpop.permute.xlu0 %1770 }
 0xca5   : > { %v1780_v28 = vsel %vm1779_vm8, %v1777_v60, %v1767_v51  ;;  %v1781_v31 = vsel %vm1779_vm8, %v1778_v49, %v1771_v61 }
 0xca6   : > { %v1784_v39 = vmul.f32 %v1782_v36, %v1780_v28  ;;  %v1785_v63 = vmul.f32 %v1783_v45, %v1781_v31 }
 0xca8   : > { %v2010_v26 = vpack.c.bf16 %v1785_v63, %v1784_v39 }
 0xcaa   : > { %2011 = vst [vmem:[%s306_s7] sm:$0xff] %v2010_v26  }
 0xcab PF: > { %s1804_s1 = sld [smem:[#allocation7]]  ;;  %s3747_s5 = sld [smem:[#allocation23_spill]] }
 0xcac   : > { %s3749_s10 = sld [smem:[#allocation27_spill]]  ;;  %s1813_s22 = sshll.u32 %s306_s7, 4  ;;  %s3582_s22 = int_to_ptr.vmem [resolvable:$true] %s1813_s22 }
 0xcad   : > { %s3750_s25 = sld [smem:[#allocation32_spill]]  ;;  %s3592_s21 = scalar_lea.sflag [#allocation11], %s304_s19 }
 0xcae   : > { %s2507_s2 = scalar_lea.vmem %s3582_s22, 128  ;;  %s2704_s7 = smov [#allocation15]  }
 0xcaf   : > { %p2508_p3 = scmp.ne.s32.totalorder %s3582_s22, %s2507_s2  ;;  %s2511_s13 = sshll.u32 %s2704_s7, 4  ;;  %s2512_s13 = int_to_ptr.vmem [resolvable:$false] %s2511_s13 }
 0xcb0   : > { %s2513_s11 = scalar_lea.vmem %s2512_s13, 256  ;;  %p2514_p8 = scmp.lt.s32.totalorder %s3582_s22, %s2512_s13 }
 0xcb1   : > { %s2006_s20 = sshll.u32 %s1804_s1, 2  ;;  %p2515_p11 = scmp.lt.s32.totalorder %s2513_s11, %s2507_s2 }
 0xcb2   : > { %s1810_s29 = sadd.s32 %s3747_s5, %s2006_s20  ;;  %p3752_p4 = scmp.ne.s32.totalorder %s3749_s10, 0 }
 0xcb3   : > { %s1998_s8 = sshll.u32 %s1810_s29, 6  ;;  %s3751_s14 = smov %s3750_s25 }
 0xcb4   : > { %s3588_s18 = scalar_lea.hbm %s3750_s25, %s1998_s8  ;;  %p2509_p2 = pnand %p2508_p3, %p3752_p4 }
 0xcb5   : > { %p2516_p5 = por %p2515_p11, %p2514_p8 }
 0xcb6   : > { %p2510_p7 = pneg %p2509_p2 }
 0xcb8   : > { %p2517_p13 = pnand %p2516_p5, %p2510_p7 }
 0xcba   : > { %2520 = shalt.err (!%p2517_p13)
}
 0xcbb   : > { %s2521_s19 = scalar_lea.hbm %s3588_s18, 128  ;;  %s2525_s5 = scalar_lea.hbm %s3751_s14, 256 }
 0xcbc   : > { %p2522_p10 = scmp.ne.s32.totalorder %s3588_s18, %s2521_s19  ;;  %p2526_p0 = scmp.lt.u32.totalorder %s3588_s18, %s3751_s14 }
 0xcbd   : > { %p2527_p6 = scmp.lt.u32.totalorder %s2525_s5, %s2521_s19  ;;  %p2529_p3 = scmp.lt.u32.totalorder %s2521_s19, %s3588_s18 }
 0xcbe   : > { %p2523_p9 = pnand %p2522_p10, %p3752_p4 }
 0xcbf   : > { %p2528_p12 = por %p2527_p6, %p2526_p0 }
 0xcc0   : > { %p2524_p1 = pneg %p2523_p9 }
 0xcc1   : > { %p2530_p2 = por %p2529_p3, %p2528_p12 }
 0xcc3   : > { %p2531_p7 = pnand %p2530_p2, %p2524_p1 }
 0xcc5   : > { %2534 = shalt.err (!%p2531_p7)
}
 0xcc6   : > { %s2705_s29 = smov 64   ;;  %s2706_s8 = smov 128  }
 0xcc7   : > { %s2707_s23 = smov 4  }
 0xcc8   : > { %2146 = dma.vmem_to_hbm [thread:$0]  (%p3752_p4), %s3582_s22, 128, %s3588_s18, %s3592_s21, %s2705_s29, %s2706_s8, %s2707_s23  }
 0xcc9 PF: > { %s3753_s3 = sld [smem:[#allocation20_spill]]  ;;  %s3754_s25 = sld [smem:[#allocation29_spill]] }
 0xcca   : > { %p3756_p11 = scmp.ge.s32.totalorder %s2669_s9, 2 }
 0xccf   : > { %s1828_s2 = sand.u32 1, %s3753_s3   ;;  %p3755_p8 = scmp.ne.s32.totalorder %s3754_s25, 0 }
 0xcd0   : > { %s1829_s7 = scalar_lea.sflag [#allocation11], %s1828_s2 }
 0xcd1   : > { %p2159_p5 = pnand %p3756_p11, %p3755_p8 }
 0xcd3   : > { %2608 = dma.done.wait (!%p2159_p5), %s1829_s7, 128  }
 0xcd4   : > { %2610 = vsyncadd (!%p2159_p5), %s1829_s7, 4294967168  ;;  %s26_s9 = sadd.s32 1, %s2669_s9   ;;  %s3758_s22 = sld [smem:[#allocation21_spill]] }
 0xcd5   : > { %p3622_p13 = scmp.ge.s32.totalorder %s26_s9, 4   ;;  %s3759_s27 = sld [smem:[#allocation22_spill]] }
 0xcd6   : > { %s3760_s10 = sld [smem:[#allocation28_spill]]  ;;  %s3761_s7 = sld [smem:[#allocation24_spill]] }
 0xcd7   : > { %s3762_s8 = sld [smem:[#allocation25_spill]]  ;;  %s3763_s23 = smov %s2621_s24 }
 0xcd8   : > { %s3764_s24 = smov %s2874_s15  ;;  %s3765_s25 = smov %s2629_s26 }
 0xcd9   : > { %s3766_s26 = smov %s2633_s0  ;;  %s3767_s0 = smov %s3009_s17 }
 0xcda   : > { %s3768_s1 = smov %s2645_s28  ;;  %s3770_s29 = smov %s2653_s30 }
 0xcdb   : > { %s3771_s30 = smov %s2657_s6  ;;  %s3772_s6 = smov %s2949_s12 }
 0xcdc   : > { %s3769_s28 = smov %s3760_s10  ;;  %25 = sbr.rel (!%p3622_p13) target bundleno = 19 (0x13), region = 126 }
 0xce3   :  { %1834 = vsyncpa [#allocation10], 1 }
 0xce4   :  { %1836 = vsyncpa [#allocation10 + $0x1], 1 }
 0xce5   :  { %1837 = vsyncpa [#allocation13], 1 }
 0xce6   :  { %1839 = vsyncpa [#allocation13 + $0x1], 1 }
 0xce7   :  { %1840 = vsyncpa [#allocation11], 1 }
 0xce8   :  { %1842 = vsyncpa [#allocation11 + $0x1], 1 }

</bundles_post_ra>
